<compile_context>
chip_gen: v6e
topology: v6e:2x2x1
jax: 0.10.0
libtpu: 0.0.40
codegen_flags: <defaults>
</compile_context>

<pallas_src>
import functools

import jax
import jax.numpy as jnp
from jax import lax
from jax.experimental import pallas as pl
from jax.experimental.pallas import tpu as pltpu


def _round_up(x, m):
  return ((x + m - 1) // m) * m


def _gru_kernel(x_ref, wih_hbm, whh_hbm, bgi_ref, bhn_ref, out_ref,
                h_scratch, gi_scratch, y_scratch, wih_vmem, whh_vmem,
                *, hidden_pad, time_block, batch_block, n_sub,
                matmul_dtype, act_dtype):
  """One grid step == one (batch_block, time_block) tile of the sequence."""
  Hp = hidden_pad
  Tc = time_block
  Bb = batch_block
  sub = Bb // n_sub
  tb = pl.program_id(1)          # time-block index (innermost, "arbitrary")

  # CORRECTNESS NOTE: the hidden-state carry in h_scratch is only valid because the
  # time axis is the innermost, sequentially executed ("arbitrary") grid axis and only
  # the batch axis is "parallel".  Never reorder the grid or mark time as parallel.
  @pl.when(tb == 0)
  def _():
    # h0 = zeros (matches torch.zeros(1, B, H) in the reference forward).
    h_scratch[...] = jnp.zeros_like(h_scratch)
    # Grid-invariant weights: DMA once per batch block from HBM into single-buffered
    # VMEM scratch (no pipeline double-buffering of the large weight matrices).
    pltpu.sync_copy(wih_hbm, wih_vmem)
    pltpu.sync_copy(whh_hbm, whh_vmem)

  # ---- Hoisted input projection (no sequential dependency) -----------------
  # gi = x @ W_ih^T + (b_ih + [b_hr, b_hz, 0]) for the whole tile as ONE matmul.
  x_blk = x_ref[...]                                       # (Bb, Tc, D)
  D = x_blk.shape[-1]
  x2d = x_blk.reshape(Bb * Tc, D).astype(matmul_dtype)
  gi2d = jnp.dot(x2d, wih_vmem[...],
                 preferred_element_type=jnp.float32)        # (Bb*Tc, 3Hp) f32
  gi2d = gi2d + bgi_ref[...]                                # fold biases once
  # Bulk transpose to time-major + one full-tile store (no per-row sublane scatter),
  # so the recurrence indexes the LEADING axis with a dynamic scalar.
  gi_scratch[...] = jnp.transpose(
      gi2d.reshape(Bb, Tc, 3 * Hp), (1, 0, 2)).astype(gi_scratch.dtype)

  whh = whh_vmem[...]                                       # (Hp, 3Hp) matmul_dtype
  # Hoist the (1,Hp)->(sub,Hp) bias broadcast out of the loop (JAX does not CSE it).
  b_hn_b = jnp.broadcast_to(bhn_ref[...], (sub, Hp))

  # ---- Recurrence -----------------------------------------------------------
  # Per step: n_sub independent (sub,Hp)x(Hp,3Hp) matmuls + gate math; independent
  # batch sub-tiles let the scheduler hide MXU-pop / EUP latency behind each other.
  def step(t, hs):
    gi_t = gi_scratch[t].astype(jnp.float32)                # (Bb, 3Hp)
    new_hs = []
    for c in range(n_sub):
      h_c = hs[c]                                           # (sub, Hp) f32
      gi_c = gi_t[c * sub:(c + 1) * sub]
      gh = jnp.dot(h_c.astype(matmul_dtype), whh,
                   preferred_element_type=jnp.float32)      # (sub, 3Hp) f32
      r = jax.nn.sigmoid(
          (gi_c[:, :Hp] + gh[:, :Hp]).astype(act_dtype)).astype(jnp.float32)
      z = jax.nn.sigmoid(
          (gi_c[:, Hp:2 * Hp] + gh[:, Hp:2 * Hp]).astype(act_dtype)
      ).astype(jnp.float32)
      n = jnp.tanh(
          (gi_c[:, 2 * Hp:] + r * (gh[:, 2 * Hp:] + b_hn_b)).astype(act_dtype)
      ).astype(jnp.float32)
      new_hs.append(n + z * (h_c - n))                      # == (1-z)*n + z*h
    h_new = new_hs[0] if n_sub == 1 else jnp.concatenate(new_hs, axis=0)
    y_scratch[t] = h_new.astype(y_scratch.dtype)
    return tuple(new_hs)

  h0 = h_scratch[...]
  hs0 = tuple(h0[c * sub:(c + 1) * sub] for c in range(n_sub))
  hs_last = lax.fori_loop(0, Tc, step, hs0, unroll=8)
  h_scratch[...] = (hs_last[0] if n_sub == 1
                    else jnp.concatenate(list(hs_last), axis=0))

  # One bulk (Tc,Bb,Hp)->(Bb,Tc,Hp) transpose + one lane-dense block store.
  out_ref[...] = jnp.transpose(y_scratch[...], (1, 0, 2)).astype(out_ref.dtype)


def seq_gru_pallas(x, w_ih, w_hh, b_ih, b_hh, hidden_dim, *,
                   time_block=None, batch_block=None,
                   matmul_dtype=jnp.float32, act_dtype=jnp.float32,
                   gi_dtype=jnp.float32,
                   vmem_limit_bytes=48 * 1024 * 1024):
  """x: (B, T, D) batch_first.  w_ih: (3H, D), w_hh: (3H, H), biases: (3H,).

  Tuning knobs (defaults keep full f32 accuracy):
    batch_block : rows per recurrent step.  >=8 fills vreg sublanes; ~128 fills MXU
                  rows (v5e MXU is 128-wide).  On v7x prefer B//batch_block >= 2 so
                  the "parallel" batch grid axis feeds both TensorCores.
    time_block  : sequence steps per grid step (multiple of 8).  Shrink on v7x
                  (64 MiB VMEM) for large D/H; raise vmem_limit_bytes accordingly.
    matmul_dtype/act_dtype/gi_dtype : bf16 options for MXU operands, EUP activations
                  (v6e/v7x only — keep f32 on v5e), and the gi VMEM scratch.
  """
  B, T, D = x.shape
  H = hidden_dim
  Hp = _round_up(H, 128)          # pad each gate to its own 128-lane tile

  # ---- tile selection + padding (end-padding only; sliced off below) --------
  if batch_block is None:
    batch_block = min(128, _round_up(B, 8))
  assert batch_block % 8 == 0 and batch_block >= 8, "batch_block must be a multiple of 8"
  if time_block is None:
    time_block = _round_up(T, 8)
  assert time_block % 8 == 0, "time_block must be a multiple of 8"

  B_pad = _round_up(B, batch_block)
  T_pad = _round_up(T, time_block)
  if (B_pad, T_pad) != (B, T):
    x = jnp.pad(x, ((0, B_pad - B), (0, T_pad - T), (0, 0)))
  Bb, Tc = batch_block, time_block

  # Interleave two independent batch sub-tiles per step only when each sub-tile still
  # fills the 8 vreg sublanes.
  n_sub = 2 if (Bb >= 16 and Bb % 16 == 0) else 1

  # ---- parameter prep (tiny arrays; glue, not hot path) ----------------------
  def pad_gate_rows(w):          # (3H, X) -> (3Hp, X): zero-pad each gate's rows
    return jnp.concatenate(
        [jnp.pad(w[g * H:(g + 1) * H], ((0, Hp - H), (0, 0))) for g in range(3)],
        axis=0)

  def pad_gate_vec(b):           # (3H,) -> (3Hp,)
    return jnp.concatenate(
        [jnp.pad(b[g * H:(g + 1) * H], (0, Hp - H)) for g in range(3)])

  wih_t = jnp.transpose(pad_gate_rows(w_ih), (1, 0)).astype(matmul_dtype)  # (D, 3Hp)
  whh_p = jnp.pad(pad_gate_rows(w_hh), ((0, 0), (0, Hp - H)))              # (3Hp, Hp)
  whh_t = jnp.transpose(whh_p, (1, 0)).astype(matmul_dtype)                # (Hp, 3Hp)
  # r/z: sigmoid(i_* + h_*) -> b_hr/b_hz fold into the hoisted projection; b_in goes
  # with gi; b_hn must stay inside r * (h W_hn^T + b_hn).
  b_gi = pad_gate_vec(
      jnp.concatenate([b_ih[:2 * H] + b_hh[:2 * H], b_ih[2 * H:]])
  ).reshape(1, 3 * Hp)
  b_hn = jnp.pad(b_hh[2 * H:], (0, Hp - H)).reshape(1, Hp)

  kernel = functools.partial(
      _gru_kernel, hidden_pad=Hp, time_block=Tc, batch_block=Bb, n_sub=n_sub,
      matmul_dtype=matmul_dtype, act_dtype=act_dtype)

  grid = (B_pad // Bb, T_pad // Tc)
  out = pl.pallas_call(
      kernel,
      out_shape=jax.ShapeDtypeStruct((B_pad, T_pad, Hp), x.dtype),
      grid_spec=pltpu.PrefetchScalarGridSpec(
          num_scalar_prefetch=0,
          grid=grid,
          in_specs=[
              pl.BlockSpec((Bb, Tc, D), lambda bb, tb: (bb, tb, 0)),  # x (native layout)
              pl.BlockSpec(memory_space=pl.ANY),                      # W_ih^T (raw HBM)
              pl.BlockSpec(memory_space=pl.ANY),                      # W_hh^T (raw HBM)
              pl.BlockSpec((1, 3 * Hp), lambda bb, tb: (0, 0)),       # folded gi bias
              pl.BlockSpec((1, Hp), lambda bb, tb: (0, 0)),           # b_hn
          ],
          out_specs=pl.BlockSpec((Bb, Tc, Hp), lambda bb, tb: (bb, tb, 0)),
          scratch_shapes=[
              pltpu.VMEM((Bb, Hp), jnp.float32),        # hidden-state carry
              pltpu.VMEM((Tc, Bb, 3 * Hp), gi_dtype),   # hoisted input projection
              pltpu.VMEM((Tc, Bb, Hp), x.dtype),        # time-major outputs
              pltpu.VMEM((D, 3 * Hp), matmul_dtype),    # W_ih^T (single-buffered)
              pltpu.VMEM((Hp, 3 * Hp), matmul_dtype),   # W_hh^T (single-buffered)
          ],
      ),
      compiler_params=pltpu.CompilerParams(
          # batch blocks are independent -> "parallel" (feeds the 2nd TC on v7x);
          # the time axis carries the recurrence through VMEM scratch -> "arbitrary".
          dimension_semantics=("parallel", "arbitrary"),
          vmem_limit_bytes=vmem_limit_bytes),
  )(x, wih_t, whh_t, b_gi, b_hn)

  return out[:B, :T, :H]


def seq_gru_reference(x, w_ih, w_hh, b_ih, b_hh, hidden_dim):
  """Pure-JAX reference matching torch.nn.GRU(batch_first=True) with h0=0."""
  B, T, D = x.shape
  H = hidden_dim
  w_ir, w_iz, w_in = w_ih[:H], w_ih[H:2 * H], w_ih[2 * H:]
  w_hr, w_hz, w_hn = w_hh[:H], w_hh[H:2 * H], w_hh[2 * H:]
  b_ir, b_iz, b_in = b_ih[:H], b_ih[H:2 * H], b_ih[2 * H:]
  b_hr, b_hz, b_hn = b_hh[:H], b_hh[H:2 * H], b_hh[2 * H:]

  def step(h, x_t):
    r = jax.nn.sigmoid(x_t @ w_ir.T + b_ir + h @ w_hr.T + b_hr)
    z = jax.nn.sigmoid(x_t @ w_iz.T + b_iz + h @ w_hz.T + b_hz)
    n = jnp.tanh(x_t @ w_in.T + b_in + r * (h @ w_hn.T + b_hn))
    h_new = (1.0 - z) * n + z * h
    return h_new, h_new

  h0 = jnp.zeros((B, H), x.dtype)
  _, out = lax.scan(step, h0, jnp.transpose(x, (1, 0, 2)))
  return jnp.transpose(out, (1, 0, 2))


if __name__ == "__main__":
  key = jax.random.PRNGKey(0)
  kx1, kx2, kx3, k1, k2, k3, k4 = jax.random.split(key, 7)

  INPUT_DIM, HIDDEN_DIM = 32, 32
  # Deterministic PyTorch-style uniform(-1/sqrt(H), 1/sqrt(H)) init.
  bound = 1.0 / jnp.sqrt(jnp.float32(HIDDEN_DIM))
  w_ih = jax.random.uniform(k1, (3 * HIDDEN_DIM, INPUT_DIM), jnp.float32, -bound, bound)
  w_hh = jax.random.uniform(k2, (3 * HIDDEN_DIM, HIDDEN_DIM), jnp.float32, -bound, bound)
  b_ih = jax.random.uniform(k3, (3 * HIDDEN_DIM,), jnp.float32, -bound, bound)
  b_hh = jax.random.uniform(k4, (3 * HIDDEN_DIM,), jnp.float32, -bound, bound)

  # Test 1: tiny module-like call (B=2, T=8); batch padded to a full 8-sublane tile.
  x1 = jax.random.normal(kx1, (2, 8, INPUT_DIM), jnp.float32)
  out1 = jax.block_until_ready(seq_gru_pallas(x1, w_ih, w_hh, b_ih, b_hh, HIDDEN_DIM))
  ref1 = seq_gru_reference(x1, w_ih, w_hh, b_ih, b_hh, HIDDEN_DIM)
  assert out1.shape == (2, 8, HIDDEN_DIM)
  assert jnp.allclose(out1, ref1, atol=2e-5, rtol=2e-5), "Pallas GRU mismatch (test 1)"

  # Test 2: grid (2, 2) — exercises the hidden-state carry across time blocks and the
  # "parallel" batch axis (>= 2 batch blocks, as recommended for v7x's two TCs).
  x2 = jax.random.normal(kx2, (16, 16, INPUT_DIM), jnp.float32)
  out2 = jax.block_until_ready(
      seq_gru_pallas(x2, w_ih, w_hh, b_ih, b_hh, HIDDEN_DIM,
                     time_block=8, batch_block=8))
  ref2 = seq_gru_reference(x2, w_ih, w_hh, b_ih, b_hh, HIDDEN_DIM)
  assert jnp.allclose(out2, ref2, atol=2e-5, rtol=2e-5), "Pallas GRU mismatch (test 2)"

  # Test 3: batch_block=16 — exercises the 2-way interleaved batch sub-tiles and a
  # ragged time length (T=10 end-padded to 16 internally, then sliced back).
  x3 = jax.random.normal(kx3, (16, 10, INPUT_DIM), jnp.float32)
  out3 = jax.block_until_ready(
      seq_gru_pallas(x3, w_ih, w_hh, b_ih, b_hh, HIDDEN_DIM, batch_block=16))
  ref3 = seq_gru_reference(x3, w_ih, w_hh, b_ih, b_hh, HIDDEN_DIM)
  assert jnp.allclose(out3, ref3, atol=2e-5, rtol=2e-5), "Pallas GRU mismatch (test 3)"

  print("KERNEL_OK")
</pallas_src>

<mosaic_0001>
module attributes {stable_mosaic.version = 11 : i64} {
  func.func @_gru_kernel(%arg0: i32, %arg1: i32, %arg2: memref<8x8x32xf32, #tpu.memory_space<vmem>>, %arg3: memref<32x384xf32, #tpu.memory_space<any>>, %arg4: memref<128x384xf32, #tpu.memory_space<any>>, %arg5: memref<1x384xf32, #tpu.memory_space<vmem>>, %arg6: memref<1x128xf32, #tpu.memory_space<vmem>>, %arg7: memref<8x8x128xf32, #tpu.memory_space<vmem>>, %arg8: memref<8x128xf32, #tpu.memory_space<vmem>>, %arg9: memref<8x8x384xf32, #tpu.memory_space<vmem>>, %arg10: memref<8x8x128xf32, #tpu.memory_space<vmem>>, %arg11: memref<32x384xf32, #tpu.memory_space<vmem>>, %arg12: memref<128x384xf32, #tpu.memory_space<vmem>>) attributes {dimension_semantics = [#tpu.dimension_semantics<parallel>, #tpu.dimension_semantics<arbitrary>], iteration_bounds = array<i64: 1, 1>, scalar_prefetch = 0 : i64, scratch_operands = 5 : i64, tpu.core_type = #tpu.core_type<tc>, window_params = [{transform_indices = @transform_0, window_bounds = array<i64: 8, 8, 32>}, {}, {}, {pipeline_mode = #tpu.pipeline_mode<synchronous>, transform_indices = @transform_3, window_bounds = array<i64: 1, 384>}, {pipeline_mode = #tpu.pipeline_mode<synchronous>, transform_indices = @transform_4, window_bounds = array<i64: 1, 128>}, {transform_indices = @transform_5, window_bounds = array<i64: 8, 8, 128>}]} {
    %c0_i32 = arith.constant 0 : i32
    %0 = arith.cmpi eq, %arg1, %c0_i32 : i32
    %1 = arith.extui %0 : i1 to i32
    %c0_i32_0 = arith.constant 0 : i32
    %2 = arith.cmpi ne, %1, %c0_i32_0 : i32
    scf.if %2 {
      %cst_81 = arith.constant 0.000000e+00 : f32
      %286 = vector.broadcast %cst_81 : f32 to vector<8x128xf32>
      %c0_82 = arith.constant 0 : index
      %c0_83 = arith.constant 0 : index
      %287 = vector.load %arg8[%c0_82, %c0_83] : memref<8x128xf32, #tpu.memory_space<vmem>>, vector<8x128xf32>
      tpu.vector_store %arg8[%c0_82, %c0_83], %286 {strides = array<i32>} : memref<8x128xf32, #tpu.memory_space<vmem>>, vector<8x128xf32>,
      "tpu.region"() ({
        %288 = tpu.sem_alloc : memref<!tpu.dma_semaphore, #tpu.memory_space<semaphore_mem>>
        tpu.enqueue_dma source(%arg3 : memref<32x384xf32, #tpu.memory_space<any>>) target(%arg11 : memref<32x384xf32, #tpu.memory_space<vmem>>) target_semaphore(%288 : memref<!tpu.dma_semaphore, #tpu.memory_space<semaphore_mem>>)
        tpu.wait_dma2 semaphore(%288 : memref<!tpu.dma_semaphore, #tpu.memory_space<semaphore_mem>>) src(%arg3 : memref<32x384xf32, #tpu.memory_space<any>>) dst(%arg11 : memref<32x384xf32, #tpu.memory_space<vmem>>)
        tpu.yield
      }) : () -> ()
      "tpu.region"() ({
        %288 = tpu.sem_alloc : memref<!tpu.dma_semaphore, #tpu.memory_space<semaphore_mem>>
        tpu.enqueue_dma source(%arg4 : memref<128x384xf32, #tpu.memory_space<any>>) target(%arg12 : memref<128x384xf32, #tpu.memory_space<vmem>>) target_semaphore(%288 : memref<!tpu.dma_semaphore, #tpu.memory_space<semaphore_mem>>)
        tpu.wait_dma2 semaphore(%288 : memref<!tpu.dma_semaphore, #tpu.memory_space<semaphore_mem>>) src(%arg4 : memref<128x384xf32, #tpu.memory_space<any>>) dst(%arg12 : memref<128x384xf32, #tpu.memory_space<vmem>>)
        tpu.yield
      }) : () -> ()
    } else {
    }
    %c0 = arith.constant 0 : index
    %c0_1 = arith.constant 0 : index
    %c0_2 = arith.constant 0 : index
    %3 = vector.load %arg2[%c0, %c0_1, %c0_2] : memref<8x8x32xf32, #tpu.memory_space<vmem>>, vector<8x8x32xf32>
    %4 = vector.shape_cast %3 : vector<8x8x32xf32> to vector<64x32xf32>
    %c0_3 = arith.constant 0 : index
    %c0_4 = arith.constant 0 : index
    %5 = vector.load %arg11[%c0_3, %c0_4] : memref<32x384xf32, #tpu.memory_space<vmem>>, vector<32x384xf32>
    %cst = arith.constant dense<0.000000e+00> : vector<64x384xf32>
    %6 = tpu.matmul %4, %5, %cst {dimension_numbers = #tpu.dot_dimension_numbers<[1], [0], [0], [1], [0, 0, 1, 1], [], []>} : vector<64x32xf32>, vector<32x384xf32>, vector<64x384xf32> -> vector<64x384xf32>
    %c0_5 = arith.constant 0 : index
    %c0_6 = arith.constant 0 : index
    %7 = vector.load %arg5[%c0_5, %c0_6] : memref<1x384xf32, #tpu.memory_space<vmem>>, vector<1x384xf32>
    %8 = vector.broadcast %7 : vector<1x384xf32> to vector<64x384xf32>
    %9 = arith.addf %6, %8 : vector<64x384xf32>
    %10 = vector.shape_cast %9 : vector<64x384xf32> to vector<8x8x384xf32>
    %11 = tpu.transpose %10, [1, 0, 2] : vector<8x8x384xf32> -> vector<8x8x384xf32>
    %c0_7 = arith.constant 0 : index
    %c0_8 = arith.constant 0 : index
    %c0_9 = arith.constant 0 : index
    %12 = vector.load %arg9[%c0_7, %c0_8, %c0_9] : memref<8x8x384xf32, #tpu.memory_space<vmem>>, vector<8x8x384xf32>
    tpu.vector_store %arg9[%c0_7, %c0_8, %c0_9], %11 {strides = array<i32>} : memref<8x8x384xf32, #tpu.memory_space<vmem>>, vector<8x8x384xf32>,
    %c0_10 = arith.constant 0 : index
    %c0_11 = arith.constant 0 : index
    %13 = vector.load %arg12[%c0_10, %c0_11] : memref<128x384xf32, #tpu.memory_space<vmem>>, vector<128x384xf32>
    %c0_12 = arith.constant 0 : index
    %c0_13 = arith.constant 0 : index
    %14 = vector.load %arg6[%c0_12, %c0_13] : memref<1x128xf32, #tpu.memory_space<vmem>>, vector<1x128xf32>
    %15 = vector.shape_cast %14 : vector<1x128xf32> to vector<1x128xf32>
    %16 = vector.broadcast %15 : vector<1x128xf32> to vector<8x128xf32>
    %c0_14 = arith.constant 0 : index
    %c0_15 = arith.constant 0 : index
    %17 = vector.load %arg8[%c0_14, %c0_15] : memref<8x128xf32, #tpu.memory_space<vmem>>, vector<8x128xf32>
    %c0_i32_16 = arith.constant 0 : i32
    %18 = arith.index_cast %c0_i32_16 : i32 to index
    %c0_17 = arith.constant 0 : index
    %c0_18 = arith.constant 0 : index
    %19 = vector.load %arg9[%18, %c0_17, %c0_18] : memref<8x8x384xf32, #tpu.memory_space<vmem>>, vector<1x8x384xf32>
    %20 = vector.shape_cast %19 : vector<1x8x384xf32> to vector<8x384xf32>
    %cst_19 = arith.constant dense<0.000000e+00> : vector<8x384xf32>
    %21 = tpu.matmul %17, %13, %cst_19 {dimension_numbers = #tpu.dot_dimension_numbers<[1], [0], [0], [1], [0, 0, 1, 1], [], []>} : vector<8x128xf32>, vector<128x384xf32>, vector<8x384xf32> -> vector<8x384xf32>
    %22 = vector.extract_strided_slice %20 {offsets = [0, 0], sizes = [8, 128], strides = [1, 1]} : vector<8x384xf32> to vector<8x128xf32>
    %23 = vector.extract_strided_slice %21 {offsets = [0, 0], sizes = [8, 128], strides = [1, 1]} : vector<8x384xf32> to vector<8x128xf32>
    %24 = arith.addf %22, %23 : vector<8x128xf32>
    %25 = arith.negf %24 : vector<8x128xf32>
    %26 = math.exp %25 : vector<8x128xf32>
    %cst_20 = arith.constant 1.000000e+00 : f32
    %27 = vector.broadcast %cst_20 : f32 to vector<8x128xf32>
    %28 = arith.addf %27, %26 : vector<8x128xf32>
    %29 = arith.divf %27, %28 : vector<8x128xf32>
    %30 = vector.extract_strided_slice %20 {offsets = [0, 128], sizes = [8, 128], strides = [1, 1]} : vector<8x384xf32> to vector<8x128xf32>
    %31 = vector.extract_strided_slice %21 {offsets = [0, 128], sizes = [8, 128], strides = [1, 1]} : vector<8x384xf32> to vector<8x128xf32>
    %32 = arith.addf %30, %31 : vector<8x128xf32>
    %33 = arith.negf %32 : vector<8x128xf32>
    %34 = math.exp %33 : vector<8x128xf32>
    %cst_21 = arith.constant 1.000000e+00 : f32
    %35 = vector.broadcast %cst_21 : f32 to vector<8x128xf32>
    %36 = arith.addf %35, %34 : vector<8x128xf32>
    %37 = arith.divf %35, %36 : vector<8x128xf32>
    %38 = vector.extract_strided_slice %20 {offsets = [0, 256], sizes = [8, 128], strides = [1, 1]} : vector<8x384xf32> to vector<8x128xf32>
    %39 = vector.extract_strided_slice %21 {offsets = [0, 256], sizes = [8, 128], strides = [1, 1]} : vector<8x384xf32> to vector<8x128xf32>
    %40 = arith.addf %39, %16 : vector<8x128xf32>
    %41 = arith.mulf %29, %40 : vector<8x128xf32>
    %42 = arith.addf %38, %41 : vector<8x128xf32>
    %43 = math.tanh %42 : vector<8x128xf32>
    %44 = arith.subf %17, %43 : vector<8x128xf32>
    %45 = arith.mulf %37, %44 : vector<8x128xf32>
    %46 = arith.addf %43, %45 : vector<8x128xf32>
    %47 = arith.index_cast %c0_i32_16 : i32 to index
    %c0_22 = arith.constant 0 : index
    %c0_23 = arith.constant 0 : index
    %48 = vector.load %arg10[%47, %c0_22, %c0_23] : memref<8x8x128xf32, #tpu.memory_space<vmem>>, vector<1x8x128xf32>
    %49 = vector.shape_cast %48 : vector<1x8x128xf32> to vector<8x128xf32>
    %50 = vector.shape_cast %46 : vector<8x128xf32> to vector<1x8x128xf32>
    tpu.vector_store %arg10[%47, %c0_22, %c0_23], %50 {strides = array<i32>} : memref<8x8x128xf32, #tpu.memory_space<vmem>>, vector<1x8x128xf32>,
    %c1_i32 = arith.constant 1 : i32
    %51 = arith.index_cast %c1_i32 : i32 to index
    %c0_24 = arith.constant 0 : index
    %c0_25 = arith.constant 0 : index
    %52 = vector.load %arg9[%51, %c0_24, %c0_25] : memref<8x8x384xf32, #tpu.memory_space<vmem>>, vector<1x8x384xf32>
    %53 = vector.shape_cast %52 : vector<1x8x384xf32> to vector<8x384xf32>
    %cst_26 = arith.constant dense<0.000000e+00> : vector<8x384xf32>
    %54 = tpu.matmul %46, %13, %cst_26 {dimension_numbers = #tpu.dot_dimension_numbers<[1], [0], [0], [1], [0, 0, 1, 1], [], []>} : vector<8x128xf32>, vector<128x384xf32>, vector<8x384xf32> -> vector<8x384xf32>
    %55 = vector.extract_strided_slice %53 {offsets = [0, 0], sizes = [8, 128], strides = [1, 1]} : vector<8x384xf32> to vector<8x128xf32>
    %56 = vector.extract_strided_slice %54 {offsets = [0, 0], sizes = [8, 128], strides = [1, 1]} : vector<8x384xf32> to vector<8x128xf32>
    %57 = arith.addf %55, %56 : vector<8x128xf32>
    %58 = arith.negf %57 : vector<8x128xf32>
    %59 = math.exp %58 : vector<8x128xf32>
    %cst_27 = arith.constant 1.000000e+00 : f32
    %60 = vector.broadcast %cst_27 : f32 to vector<8x128xf32>
    %61 = arith.addf %60, %59 : vector<8x128xf32>
    %62 = arith.divf %60, %61 : vector<8x128xf32>
    %63 = vector.extract_strided_slice %53 {offsets = [0, 128], sizes = [8, 128], strides = [1, 1]} : vector<8x384xf32> to vector<8x128xf32>
    %64 = vector.extract_strided_slice %54 {offsets = [0, 128], sizes = [8, 128], strides = [1, 1]} : vector<8x384xf32> to vector<8x128xf32>
    %65 = arith.addf %63, %64 : vector<8x128xf32>
    %66 = arith.negf %65 : vector<8x128xf32>
    %67 = math.exp %66 : vector<8x128xf32>
    %cst_28 = arith.constant 1.000000e+00 : f32
    %68 = vector.broadcast %cst_28 : f32 to vector<8x128xf32>
    %69 = arith.addf %68, %67 : vector<8x128xf32>
    %70 = arith.divf %68, %69 : vector<8x128xf32>
    %71 = vector.extract_strided_slice %53 {offsets = [0, 256], sizes = [8, 128], strides = [1, 1]} : vector<8x384xf32> to vector<8x128xf32>
    %72 = vector.extract_strided_slice %54 {offsets = [0, 256], sizes = [8, 128], strides = [1, 1]} : vector<8x384xf32> to vector<8x128xf32>
    %73 = arith.addf %72, %16 : vector<8x128xf32>
    %74 = arith.mulf %62, %73 : vector<8x128xf32>
    %75 = arith.addf %71, %74 : vector<8x128xf32>
    %76 = math.tanh %75 : vector<8x128xf32>
    %77 = arith.subf %46, %76 : vector<8x128xf32>
    %78 = arith.mulf %70, %77 : vector<8x128xf32>
    %79 = arith.addf %76, %78 : vector<8x128xf32>
    %80 = arith.index_cast %c1_i32 : i32 to index
    %c0_29 = arith.constant 0 : index
    %c0_30 = arith.constant 0 : index
    %81 = vector.load %arg10[%80, %c0_29, %c0_30] : memref<8x8x128xf32, #tpu.memory_space<vmem>>, vector<1x8x128xf32>
    %82 = vector.shape_cast %81 : vector<1x8x128xf32> to vector<8x128xf32>
    %83 = vector.shape_cast %79 : vector<8x128xf32> to vector<1x8x128xf32>
    tpu.vector_store %arg10[%80, %c0_29, %c0_30], %83 {strides = array<i32>} : memref<8x8x128xf32, #tpu.memory_space<vmem>>, vector<1x8x128xf32>,
    %c2_i32 = arith.constant 2 : i32
    %84 = arith.index_cast %c2_i32 : i32 to index
    %c0_31 = arith.constant 0 : index
    %c0_32 = arith.constant 0 : index
    %85 = vector.load %arg9[%84, %c0_31, %c0_32] : memref<8x8x384xf32, #tpu.memory_space<vmem>>, vector<1x8x384xf32>
    %86 = vector.shape_cast %85 : vector<1x8x384xf32> to vector<8x384xf32>
    %cst_33 = arith.constant dense<0.000000e+00> : vector<8x384xf32>
    %87 = tpu.matmul %79, %13, %cst_33 {dimension_numbers = #tpu.dot_dimension_numbers<[1], [0], [0], [1], [0, 0, 1, 1], [], []>} : vector<8x128xf32>, vector<128x384xf32>, vector<8x384xf32> -> vector<8x384xf32>
    %88 = vector.extract_strided_slice %86 {offsets = [0, 0], sizes = [8, 128], strides = [1, 1]} : vector<8x384xf32> to vector<8x128xf32>
    %89 = vector.extract_strided_slice %87 {offsets = [0, 0], sizes = [8, 128], strides = [1, 1]} : vector<8x384xf32> to vector<8x128xf32>
    %90 = arith.addf %88, %89 : vector<8x128xf32>
    %91 = arith.negf %90 : vector<8x128xf32>
    %92 = math.exp %91 : vector<8x128xf32>
    %cst_34 = arith.constant 1.000000e+00 : f32
    %93 = vector.broadcast %cst_34 : f32 to vector<8x128xf32>
    %94 = arith.addf %93, %92 : vector<8x128xf32>
    %95 = arith.divf %93, %94 : vector<8x128xf32>
    %96 = vector.extract_strided_slice %86 {offsets = [0, 128], sizes = [8, 128], strides = [1, 1]} : vector<8x384xf32> to vector<8x128xf32>
    %97 = vector.extract_strided_slice %87 {offsets = [0, 128], sizes = [8, 128], strides = [1, 1]} : vector<8x384xf32> to vector<8x128xf32>
    %98 = arith.addf %96, %97 : vector<8x128xf32>
    %99 = arith.negf %98 : vector<8x128xf32>
    %100 = math.exp %99 : vector<8x128xf32>
    %cst_35 = arith.constant 1.000000e+00 : f32
    %101 = vector.broadcast %cst_35 : f32 to vector<8x128xf32>
    %102 = arith.addf %101, %100 : vector<8x128xf32>
    %103 = arith.divf %101, %102 : vector<8x128xf32>
    %104 = vector.extract_strided_slice %86 {offsets = [0, 256], sizes = [8, 128], strides = [1, 1]} : vector<8x384xf32> to vector<8x128xf32>
    %105 = vector.extract_strided_slice %87 {offsets = [0, 256], sizes = [8, 128], strides = [1, 1]} : vector<8x384xf32> to vector<8x128xf32>
    %106 = arith.addf %105, %16 : vector<8x128xf32>
    %107 = arith.mulf %95, %106 : vector<8x128xf32>
    %108 = arith.addf %104, %107 : vector<8x128xf32>
    %109 = math.tanh %108 : vector<8x128xf32>
    %110 = arith.subf %79, %109 : vector<8x128xf32>
    %111 = arith.mulf %103, %110 : vector<8x128xf32>
    %112 = arith.addf %109, %111 : vector<8x128xf32>
    %113 = arith.index_cast %c2_i32 : i32 to index
    %c0_36 = arith.constant 0 : index
    %c0_37 = arith.constant 0 : index
    %114 = vector.load %arg10[%113, %c0_36, %c0_37] : memref<8x8x128xf32, #tpu.memory_space<vmem>>, vector<1x8x128xf32>
    %115 = vector.shape_cast %114 : vector<1x8x128xf32> to vector<8x128xf32>
    %116 = vector.shape_cast %112 : vector<8x128xf32> to vector<1x8x128xf32>
    tpu.vector_store %arg10[%113, %c0_36, %c0_37], %116 {strides = array<i32>} : memref<8x8x128xf32, #tpu.memory_space<vmem>>, vector<1x8x128xf32>,
    %c3_i32 = arith.constant 3 : i32
    %117 = arith.index_cast %c3_i32 : i32 to index
    %c0_38 = arith.constant 0 : index
    %c0_39 = arith.constant 0 : index
    %118 = vector.load %arg9[%117, %c0_38, %c0_39] : memref<8x8x384xf32, #tpu.memory_space<vmem>>, vector<1x8x384xf32>
    %119 = vector.shape_cast %118 : vector<1x8x384xf32> to vector<8x384xf32>
    %cst_40 = arith.constant dense<0.000000e+00> : vector<8x384xf32>
    %120 = tpu.matmul %112, %13, %cst_40 {dimension_numbers = #tpu.dot_dimension_numbers<[1], [0], [0], [1], [0, 0, 1, 1], [], []>} : vector<8x128xf32>, vector<128x384xf32>, vector<8x384xf32> -> vector<8x384xf32>
    %121 = vector.extract_strided_slice %119 {offsets = [0, 0], sizes = [8, 128], strides = [1, 1]} : vector<8x384xf32> to vector<8x128xf32>
    %122 = vector.extract_strided_slice %120 {offsets = [0, 0], sizes = [8, 128], strides = [1, 1]} : vector<8x384xf32> to vector<8x128xf32>
    %123 = arith.addf %121, %122 : vector<8x128xf32>
    %124 = arith.negf %123 : vector<8x128xf32>
    %125 = math.exp %124 : vector<8x128xf32>
    %cst_41 = arith.constant 1.000000e+00 : f32
    %126 = vector.broadcast %cst_41 : f32 to vector<8x128xf32>
    %127 = arith.addf %126, %125 : vector<8x128xf32>
    %128 = arith.divf %126, %127 : vector<8x128xf32>
    %129 = vector.extract_strided_slice %119 {offsets = [0, 128], sizes = [8, 128], strides = [1, 1]} : vector<8x384xf32> to vector<8x128xf32>
    %130 = vector.extract_strided_slice %120 {offsets = [0, 128], sizes = [8, 128], strides = [1, 1]} : vector<8x384xf32> to vector<8x128xf32>
    %131 = arith.addf %129, %130 : vector<8x128xf32>
    %132 = arith.negf %131 : vector<8x128xf32>
    %133 = math.exp %132 : vector<8x128xf32>
    %cst_42 = arith.constant 1.000000e+00 : f32
    %134 = vector.broadcast %cst_42 : f32 to vector<8x128xf32>
    %135 = arith.addf %134, %133 : vector<8x128xf32>
    %136 = arith.divf %134, %135 : vector<8x128xf32>
    %137 = vector.extract_strided_slice %119 {offsets = [0, 256], sizes = [8, 128], strides = [1, 1]} : vector<8x384xf32> to vector<8x128xf32>
    %138 = vector.extract_strided_slice %120 {offsets = [0, 256], sizes = [8, 128], strides = [1, 1]} : vector<8x384xf32> to vector<8x128xf32>
    %139 = arith.addf %138, %16 : vector<8x128xf32>
    %140 = arith.mulf %128, %139 : vector<8x128xf32>
    %141 = arith.addf %137, %140 : vector<8x128xf32>
    %142 = math.tanh %141 : vector<8x128xf32>
    %143 = arith.subf %112, %142 : vector<8x128xf32>
    %144 = arith.mulf %136, %143 : vector<8x128xf32>
    %145 = arith.addf %142, %144 : vector<8x128xf32>
    %146 = arith.index_cast %c3_i32 : i32 to index
    %c0_43 = arith.constant 0 : index
    %c0_44 = arith.constant 0 : index
    %147 = vector.load %arg10[%146, %c0_43, %c0_44] : memref<8x8x128xf32, #tpu.memory_space<vmem>>, vector<1x8x128xf32>
    %148 = vector.shape_cast %147 : vector<1x8x128xf32> to vector<8x128xf32>
    %149 = vector.shape_cast %145 : vector<8x128xf32> to vector<1x8x128xf32>
    tpu.vector_store %arg10[%146, %c0_43, %c0_44], %149 {strides = array<i32>} : memref<8x8x128xf32, #tpu.memory_space<vmem>>, vector<1x8x128xf32>,
    %c4_i32 = arith.constant 4 : i32
    %150 = arith.index_cast %c4_i32 : i32 to index
    %c0_45 = arith.constant 0 : index
    %c0_46 = arith.constant 0 : index
    %151 = vector.load %arg9[%150, %c0_45, %c0_46] : memref<8x8x384xf32, #tpu.memory_space<vmem>>, vector<1x8x384xf32>
    %152 = vector.shape_cast %151 : vector<1x8x384xf32> to vector<8x384xf32>
    %cst_47 = arith.constant dense<0.000000e+00> : vector<8x384xf32>
    %153 = tpu.matmul %145, %13, %cst_47 {dimension_numbers = #tpu.dot_dimension_numbers<[1], [0], [0], [1], [0, 0, 1, 1], [], []>} : vector<8x128xf32>, vector<128x384xf32>, vector<8x384xf32> -> vector<8x384xf32>
    %154 = vector.extract_strided_slice %152 {offsets = [0, 0], sizes = [8, 128], strides = [1, 1]} : vector<8x384xf32> to vector<8x128xf32>
    %155 = vector.extract_strided_slice %153 {offsets = [0, 0], sizes = [8, 128], strides = [1, 1]} : vector<8x384xf32> to vector<8x128xf32>
    %156 = arith.addf %154, %155 : vector<8x128xf32>
    %157 = arith.negf %156 : vector<8x128xf32>
    %158 = math.exp %157 : vector<8x128xf32>
    %cst_48 = arith.constant 1.000000e+00 : f32
    %159 = vector.broadcast %cst_48 : f32 to vector<8x128xf32>
    %160 = arith.addf %159, %158 : vector<8x128xf32>
    %161 = arith.divf %159, %160 : vector<8x128xf32>
    %162 = vector.extract_strided_slice %152 {offsets = [0, 128], sizes = [8, 128], strides = [1, 1]} : vector<8x384xf32> to vector<8x128xf32>
    %163 = vector.extract_strided_slice %153 {offsets = [0, 128], sizes = [8, 128], strides = [1, 1]} : vector<8x384xf32> to vector<8x128xf32>
    %164 = arith.addf %162, %163 : vector<8x128xf32>
    %165 = arith.negf %164 : vector<8x128xf32>
    %166 = math.exp %165 : vector<8x128xf32>
    %cst_49 = arith.constant 1.000000e+00 : f32
    %167 = vector.broadcast %cst_49 : f32 to vector<8x128xf32>
    %168 = arith.addf %167, %166 : vector<8x128xf32>
    %169 = arith.divf %167, %168 : vector<8x128xf32>
    %170 = vector.extract_strided_slice %152 {offsets = [0, 256], sizes = [8, 128], strides = [1, 1]} : vector<8x384xf32> to vector<8x128xf32>
    %171 = vector.extract_strided_slice %153 {offsets = [0, 256], sizes = [8, 128], strides = [1, 1]} : vector<8x384xf32> to vector<8x128xf32>
    %172 = arith.addf %171, %16 : vector<8x128xf32>
    %173 = arith.mulf %161, %172 : vector<8x128xf32>
    %174 = arith.addf %170, %173 : vector<8x128xf32>
    %175 = math.tanh %174 : vector<8x128xf32>
    %176 = arith.subf %145, %175 : vector<8x128xf32>
    %177 = arith.mulf %169, %176 : vector<8x128xf32>
    %178 = arith.addf %175, %177 : vector<8x128xf32>
    %179 = arith.index_cast %c4_i32 : i32 to index
    %c0_50 = arith.constant 0 : index
    %c0_51 = arith.constant 0 : index
    %180 = vector.load %arg10[%179, %c0_50, %c0_51] : memref<8x8x128xf32, #tpu.memory_space<vmem>>, vector<1x8x128xf32>
    %181 = vector.shape_cast %180 : vector<1x8x128xf32> to vector<8x128xf32>
    %182 = vector.shape_cast %178 : vector<8x128xf32> to vector<1x8x128xf32>
    tpu.vector_store %arg10[%179, %c0_50, %c0_51], %182 {strides = array<i32>} : memref<8x8x128xf32, #tpu.memory_space<vmem>>, vector<1x8x128xf32>,
    %c5_i32 = arith.constant 5 : i32
    %183 = arith.index_cast %c5_i32 : i32 to index
    %c0_52 = arith.constant 0 : index
    %c0_53 = arith.constant 0 : index
    %184 = vector.load %arg9[%183, %c0_52, %c0_53] : memref<8x8x384xf32, #tpu.memory_space<vmem>>, vector<1x8x384xf32>
    %185 = vector.shape_cast %184 : vector<1x8x384xf32> to vector<8x384xf32>
    %cst_54 = arith.constant dense<0.000000e+00> : vector<8x384xf32>
    %186 = tpu.matmul %178, %13, %cst_54 {dimension_numbers = #tpu.dot_dimension_numbers<[1], [0], [0], [1], [0, 0, 1, 1], [], []>} : vector<8x128xf32>, vector<128x384xf32>, vector<8x384xf32> -> vector<8x384xf32>
    %187 = vector.extract_strided_slice %185 {offsets = [0, 0], sizes = [8, 128], strides = [1, 1]} : vector<8x384xf32> to vector<8x128xf32>
    %188 = vector.extract_strided_slice %186 {offsets = [0, 0], sizes = [8, 128], strides = [1, 1]} : vector<8x384xf32> to vector<8x128xf32>
    %189 = arith.addf %187, %188 : vector<8x128xf32>
    %190 = arith.negf %189 : vector<8x128xf32>
    %191 = math.exp %190 : vector<8x128xf32>
    %cst_55 = arith.constant 1.000000e+00 : f32
    %192 = vector.broadcast %cst_55 : f32 to vector<8x128xf32>
    %193 = arith.addf %192, %191 : vector<8x128xf32>
    %194 = arith.divf %192, %193 : vector<8x128xf32>
    %195 = vector.extract_strided_slice %185 {offsets = [0, 128], sizes = [8, 128], strides = [1, 1]} : vector<8x384xf32> to vector<8x128xf32>
    %196 = vector.extract_strided_slice %186 {offsets = [0, 128], sizes = [8, 128], strides = [1, 1]} : vector<8x384xf32> to vector<8x128xf32>
    %197 = arith.addf %195, %196 : vector<8x128xf32>
    %198 = arith.negf %197 : vector<8x128xf32>
    %199 = math.exp %198 : vector<8x128xf32>
    %cst_56 = arith.constant 1.000000e+00 : f32
    %200 = vector.broadcast %cst_56 : f32 to vector<8x128xf32>
    %201 = arith.addf %200, %199 : vector<8x128xf32>
    %202 = arith.divf %200, %201 : vector<8x128xf32>
    %203 = vector.extract_strided_slice %185 {offsets = [0, 256], sizes = [8, 128], strides = [1, 1]} : vector<8x384xf32> to vector<8x128xf32>
    %204 = vector.extract_strided_slice %186 {offsets = [0, 256], sizes = [8, 128], strides = [1, 1]} : vector<8x384xf32> to vector<8x128xf32>
    %205 = arith.addf %204, %16 : vector<8x128xf32>
    %206 = arith.mulf %194, %205 : vector<8x128xf32>
    %207 = arith.addf %203, %206 : vector<8x128xf32>
    %208 = math.tanh %207 : vector<8x128xf32>
    %209 = arith.subf %178, %208 : vector<8x128xf32>
    %210 = arith.mulf %202, %209 : vector<8x128xf32>
    %211 = arith.addf %208, %210 : vector<8x128xf32>
    %212 = arith.index_cast %c5_i32 : i32 to index
    %c0_57 = arith.constant 0 : index
    %c0_58 = arith.constant 0 : index
    %213 = vector.load %arg10[%212, %c0_57, %c0_58] : memref<8x8x128xf32, #tpu.memory_space<vmem>>, vector<1x8x128xf32>
    %214 = vector.shape_cast %213 : vector<1x8x128xf32> to vector<8x128xf32>
    %215 = vector.shape_cast %211 : vector<8x128xf32> to vector<1x8x128xf32>
    tpu.vector_store %arg10[%212, %c0_57, %c0_58], %215 {strides = array<i32>} : memref<8x8x128xf32, #tpu.memory_space<vmem>>, vector<1x8x128xf32>,
    %c6_i32 = arith.constant 6 : i32
    %216 = arith.index_cast %c6_i32 : i32 to index
    %c0_59 = arith.constant 0 : index
    %c0_60 = arith.constant 0 : index
    %217 = vector.load %arg9[%216, %c0_59, %c0_60] : memref<8x8x384xf32, #tpu.memory_space<vmem>>, vector<1x8x384xf32>
    %218 = vector.shape_cast %217 : vector<1x8x384xf32> to vector<8x384xf32>
    %cst_61 = arith.constant dense<0.000000e+00> : vector<8x384xf32>
    %219 = tpu.matmul %211, %13, %cst_61 {dimension_numbers = #tpu.dot_dimension_numbers<[1], [0], [0], [1], [0, 0, 1, 1], [], []>} : vector<8x128xf32>, vector<128x384xf32>, vector<8x384xf32> -> vector<8x384xf32>
    %220 = vector.extract_strided_slice %218 {offsets = [0, 0], sizes = [8, 128], strides = [1, 1]} : vector<8x384xf32> to vector<8x128xf32>
    %221 = vector.extract_strided_slice %219 {offsets = [0, 0], sizes = [8, 128], strides = [1, 1]} : vector<8x384xf32> to vector<8x128xf32>
    %222 = arith.addf %220, %221 : vector<8x128xf32>
    %223 = arith.negf %222 : vector<8x128xf32>
    %224 = math.exp %223 : vector<8x128xf32>
    %cst_62 = arith.constant 1.000000e+00 : f32
    %225 = vector.broadcast %cst_62 : f32 to vector<8x128xf32>
    %226 = arith.addf %225, %224 : vector<8x128xf32>
    %227 = arith.divf %225, %226 : vector<8x128xf32>
    %228 = vector.extract_strided_slice %218 {offsets = [0, 128], sizes = [8, 128], strides = [1, 1]} : vector<8x384xf32> to vector<8x128xf32>
    %229 = vector.extract_strided_slice %219 {offsets = [0, 128], sizes = [8, 128], strides = [1, 1]} : vector<8x384xf32> to vector<8x128xf32>
    %230 = arith.addf %228, %229 : vector<8x128xf32>
    %231 = arith.negf %230 : vector<8x128xf32>
    %232 = math.exp %231 : vector<8x128xf32>
    %cst_63 = arith.constant 1.000000e+00 : f32
    %233 = vector.broadcast %cst_63 : f32 to vector<8x128xf32>
    %234 = arith.addf %233, %232 : vector<8x128xf32>
    %235 = arith.divf %233, %234 : vector<8x128xf32>
    %236 = vector.extract_strided_slice %218 {offsets = [0, 256], sizes = [8, 128], strides = [1, 1]} : vector<8x384xf32> to vector<8x128xf32>
    %237 = vector.extract_strided_slice %219 {offsets = [0, 256], sizes = [8, 128], strides = [1, 1]} : vector<8x384xf32> to vector<8x128xf32>
    %238 = arith.addf %237, %16 : vector<8x128xf32>
    %239 = arith.mulf %227, %238 : vector<8x128xf32>
    %240 = arith.addf %236, %239 : vector<8x128xf32>
    %241 = math.tanh %240 : vector<8x128xf32>
    %242 = arith.subf %211, %241 : vector<8x128xf32>
    %243 = arith.mulf %235, %242 : vector<8x128xf32>
    %244 = arith.addf %241, %243 : vector<8x128xf32>
    %245 = arith.index_cast %c6_i32 : i32 to index
    %c0_64 = arith.constant 0 : index
    %c0_65 = arith.constant 0 : index
    %246 = vector.load %arg10[%245, %c0_64, %c0_65] : memref<8x8x128xf32, #tpu.memory_space<vmem>>, vector<1x8x128xf32>
    %247 = vector.shape_cast %246 : vector<1x8x128xf32> to vector<8x128xf32>
    %248 = vector.shape_cast %244 : vector<8x128xf32> to vector<1x8x128xf32>
    tpu.vector_store %arg10[%245, %c0_64, %c0_65], %248 {strides = array<i32>} : memref<8x8x128xf32, #tpu.memory_space<vmem>>, vector<1x8x128xf32>,
    %c7_i32 = arith.constant 7 : i32
    %249 = arith.index_cast %c7_i32 : i32 to index
    %c0_66 = arith.constant 0 : index
    %c0_67 = arith.constant 0 : index
    %250 = vector.load %arg9[%249, %c0_66, %c0_67] : memref<8x8x384xf32, #tpu.memory_space<vmem>>, vector<1x8x384xf32>
    %251 = vector.shape_cast %250 : vector<1x8x384xf32> to vector<8x384xf32>
    %cst_68 = arith.constant dense<0.000000e+00> : vector<8x384xf32>
    %252 = tpu.matmul %244, %13, %cst_68 {dimension_numbers = #tpu.dot_dimension_numbers<[1], [0], [0], [1], [0, 0, 1, 1], [], []>} : vector<8x128xf32>, vector<128x384xf32>, vector<8x384xf32> -> vector<8x384xf32>
    %253 = vector.extract_strided_slice %251 {offsets = [0, 0], sizes = [8, 128], strides = [1, 1]} : vector<8x384xf32> to vector<8x128xf32>
    %254 = vector.extract_strided_slice %252 {offsets = [0, 0], sizes = [8, 128], strides = [1, 1]} : vector<8x384xf32> to vector<8x128xf32>
    %255 = arith.addf %253, %254 : vector<8x128xf32>
    %256 = arith.negf %255 : vector<8x128xf32>
    %257 = math.exp %256 : vector<8x128xf32>
    %cst_69 = arith.constant 1.000000e+00 : f32
    %258 = vector.broadcast %cst_69 : f32 to vector<8x128xf32>
    %259 = arith.addf %258, %257 : vector<8x128xf32>
    %260 = arith.divf %258, %259 : vector<8x128xf32>
    %261 = vector.extract_strided_slice %251 {offsets = [0, 128], sizes = [8, 128], strides = [1, 1]} : vector<8x384xf32> to vector<8x128xf32>
    %262 = vector.extract_strided_slice %252 {offsets = [0, 128], sizes = [8, 128], strides = [1, 1]} : vector<8x384xf32> to vector<8x128xf32>
    %263 = arith.addf %261, %262 : vector<8x128xf32>
    %264 = arith.negf %263 : vector<8x128xf32>
    %265 = math.exp %264 : vector<8x128xf32>
    %cst_70 = arith.constant 1.000000e+00 : f32
    %266 = vector.broadcast %cst_70 : f32 to vector<8x128xf32>
    %267 = arith.addf %266, %265 : vector<8x128xf32>
    %268 = arith.divf %266, %267 : vector<8x128xf32>
    %269 = vector.extract_strided_slice %251 {offsets = [0, 256], sizes = [8, 128], strides = [1, 1]} : vector<8x384xf32> to vector<8x128xf32>
    %270 = vector.extract_strided_slice %252 {offsets = [0, 256], sizes = [8, 128], strides = [1, 1]} : vector<8x384xf32> to vector<8x128xf32>
    %271 = arith.addf %270, %16 : vector<8x128xf32>
    %272 = arith.mulf %260, %271 : vector<8x128xf32>
    %273 = arith.addf %269, %272 : vector<8x128xf32>
    %274 = math.tanh %273 : vector<8x128xf32>
    %275 = arith.subf %244, %274 : vector<8x128xf32>
    %276 = arith.mulf %268, %275 : vector<8x128xf32>
    %277 = arith.addf %274, %276 : vector<8x128xf32>
    %278 = arith.index_cast %c7_i32 : i32 to index
    %c0_71 = arith.constant 0 : index
    %c0_72 = arith.constant 0 : index
    %279 = vector.load %arg10[%278, %c0_71, %c0_72] : memref<8x8x128xf32, #tpu.memory_space<vmem>>, vector<1x8x128xf32>
    %280 = vector.shape_cast %279 : vector<1x8x128xf32> to vector<8x128xf32>
    %281 = vector.shape_cast %277 : vector<8x128xf32> to vector<1x8x128xf32>
    tpu.vector_store %arg10[%278, %c0_71, %c0_72], %281 {strides = array<i32>} : memref<8x8x128xf32, #tpu.memory_space<vmem>>, vector<1x8x128xf32>,
    %c8_i32 = arith.constant 8 : i32
    %c0_73 = arith.constant 0 : index
    %c0_74 = arith.constant 0 : index
    %282 = vector.load %arg8[%c0_73, %c0_74] : memref<8x128xf32, #tpu.memory_space<vmem>>, vector<8x128xf32>
    tpu.vector_store %arg8[%c0_73, %c0_74], %277 {strides = array<i32>} : memref<8x128xf32, #tpu.memory_space<vmem>>, vector<8x128xf32>,
    %c0_75 = arith.constant 0 : index
    %c0_76 = arith.constant 0 : index
    %c0_77 = arith.constant 0 : index
    %283 = vector.load %arg10[%c0_75, %c0_76, %c0_77] : memref<8x8x128xf32, #tpu.memory_space<vmem>>, vector<8x8x128xf32>
    %284 = tpu.transpose %283, [1, 0, 2] : vector<8x8x128xf32> -> vector<8x8x128xf32>
    %c0_78 = arith.constant 0 : index
    %c0_79 = arith.constant 0 : index
    %c0_80 = arith.constant 0 : index
    %285 = vector.load %arg7[%c0_78, %c0_79, %c0_80] : memref<8x8x128xf32, #tpu.memory_space<vmem>>, vector<8x8x128xf32>
    tpu.vector_store %arg7[%c0_78, %c0_79, %c0_80], %284 {strides = array<i32>} : memref<8x8x128xf32, #tpu.memory_space<vmem>>, vector<8x8x128xf32>,
    return
  }
  func.func @transform_0(%arg0: i32, %arg1: i32) -> (i32, i32, i32) {
    %c0_i32 = arith.constant 0 : i32
    %c0_i32_0 = arith.constant 0 : i32
    return %arg0, %arg1, %c0_i32 : i32, i32, i32
  }
  func.func @transform_3(%arg0: i32, %arg1: i32) -> (i32, i32) {
    %c0_i32 = arith.constant 0 : i32
    %c0_i32_0 = arith.constant 0 : i32
    %c0_i32_1 = arith.constant 0 : i32
    return %c0_i32, %c0_i32_0 : i32, i32
  }
  func.func @transform_4(%arg0: i32, %arg1: i32) -> (i32, i32) {
    %c0_i32 = arith.constant 0 : i32
    %c0_i32_0 = arith.constant 0 : i32
    %c0_i32_1 = arith.constant 0 : i32
    return %c0_i32, %c0_i32_0 : i32, i32
  }
  func.func @transform_5(%arg0: i32, %arg1: i32) -> (i32, i32, i32) {
    %c0_i32 = arith.constant 0 : i32
    %c0_i32_0 = arith.constant 0 : i32
    return %arg0, %arg1, %c0_i32 : i32, i32, i32
  }
}

</mosaic_0001>

<bundles_post_ra>
// kernel: tpu_custom_call.1
= control target key start
LH: loop header
LB: loop body
LE: loop exit
PB: predicated region body
PF: predicated region fallthrough
CT: control target
= control target key end

     0   :  { %10 = vsyncpa [#allocation8], 0  ;;  %s4234_s0 = inlined_call_operand.hbm [shape: f32[8,8,32], index: 0, kind: input, shape index: {}]   ;;  %s4235_s1 = inlined_call_operand.hbm [shape: f32[32,384], index: 1, kind: input, shape index: {}]   ;;  %s4236_s2 = inlined_call_operand.hbm [shape: f32[128,384], index: 2, kind: input, shape index: {}]   ;;  %s4237_s3 = inlined_call_operand.vmem [shape: f32[1,384], index: 3, kind: input, shape index: {}]   ;;  %s4238_s4 = inlined_call_operand.vmem [shape: f32[1,128], index: 4, kind: input, shape index: {}]   ;;  %s4239_s5 = inlined_call_operand.hbm [shape: f32[8,8,128], index: 5, kind: output, shape index: {}]  }
   0x1   :  { %11 = vsyncpa [#allocation9], 0  ;;  %s3054_s18 = smov [#allocation7]  }
   0x2   :  { %s17_s19 = sshll.u32 %s3054_s18, 4  ;;  %s18_s19 = int_to_ptr.vmem [resolvable:$true] %s17_s19 }
   0x3   :  { %s2974_s20 = scalar_lea.vmem %s18_s19, 1024  ;;  %p2979_p1 = scmp.lt.s32.totalorder %s18_s19, %s18_s19 }
   0x4   :  { %p2975_p0 = scmp.ne.s32.totalorder %s18_s19, %s2974_s20  ;;  %p2980_p2 = scmp.lt.s32.totalorder %s2974_s20, %s2974_s20 }
   0x6   :  { %p2981_p3 = por %p2980_p2, %p2979_p1 }
   0x8   :  { %p2982_p4 = pnand %p2981_p3, %p2975_p0 }
   0xa   :  { %2985 = shalt.err (!%p2982_p4)
}
   0xb   :  { %s3055_s21 = smov 128   ;;  %s3056_s22 = smov 8  }
   0xc   :  { %23 = dma.hbm_to_vmem [thread:$0]  %s4234_s0, 1024, %s18_s19, [#allocation8], %s3055_s21, %s3055_s21, %s3056_s22  }
   0xd   :  { %3046 = dma.done.wait [#allocation8], 1024  }
   0xe   :  { %3047 = vsyncadd [#allocation8], 4294966272 }
   0xf   :  { %s3057_s25 = smov [#allocation5]  }
  0x10   :  { %s43_s26 = sshll.u32 %s3057_s25, 4  ;;  %s44_s26 = int_to_ptr.vmem [resolvable:$true] %s43_s26 }
  0x11   :  { %s2994_s27 = scalar_lea.vmem %s44_s26, 1536  ;;  %p2999_p6 = scmp.lt.s32.totalorder %s44_s26, %s44_s26 }
  0x12   :  { %p2995_p5 = scmp.ne.s32.totalorder %s44_s26, %s2994_s27  ;;  %p3000_p7 = scmp.lt.s32.totalorder %s2994_s27, %s2994_s27 }
  0x14   :  { %p3001_p8 = por %p3000_p7, %p2999_p6 }
  0x16   :  { %p3002_p9 = pnand %p3001_p8, %p2995_p5 }
  0x18   :  { %3005 = shalt.err (!%p3002_p9)  }
  0x19   :  { %46 = dma.hbm_to_vmem [thread:$0]  %s4235_s1, 1536, %s44_s26, [#allocation11] }
  0x1a   :  { %3048 = dma.done.wait [#allocation11], 1536 }
  0x1b   :  { %3049 = vsyncadd [#allocation11], 4294965760 }
  0x1c   :  { %s3058_s30 = smov [#allocation6]  }
  0x1d   :  { %s58_s0 = sshll.u32 %s3058_s30, 4  ;;  %s59_s0 = int_to_ptr.vmem [resolvable:$true] %s58_s0 }
  0x1e   :  { %s3014_s6 = scalar_lea.vmem %s59_s0, 6144  ;;  %p3019_p11 = scmp.lt.s32.totalorder %s59_s0, %s59_s0 }
  0x1f   :  { %p3015_p10 = scmp.ne.s32.totalorder %s59_s0, %s3014_s6  ;;  %p3020_p12 = scmp.lt.s32.totalorder %s3014_s6, %s3014_s6 }
  0x21   :  { %p3021_p13 = por %p3020_p12, %p3019_p11 }
  0x23   :  { %p3022_p0 = pnand %p3021_p13, %p3015_p10 }
  0x25   :  { %3025 = shalt.err (!%p3022_p0)  }
  0x26   :  { %61 = dma.hbm_to_vmem [thread:$0]  %s4236_s2, 6144, %s59_s0, [#allocation16] }
  0x27   :  { %3050 = dma.done.wait [#allocation16], 6144 }
  0x28   :  { %3051 = vsyncadd [#allocation16], 4294961152  ;;  %v84_v0 = vld [vmem:[#allocation5 + $0x50] sm:$0xff]  ;;  %v83_v1 = vld [vmem:[#allocation5 + $0x48] sm:$0xff]  ;;  %v4240_v4 = vmov 0.0   ;;  %vm103_vm0 = vcmask 261120  }
  0x29   :  { %v81_v2 = vld [vmem:[#allocation5 + $0x38] sm:$0xff]  ;;  %152 = vmatprep.subr.mxu0 %v84_v0  ;;  %v80_v3 = vld [vmem:[#allocation5 + $0x30] sm:$0xff]  ;;  %192 = vmatprep.mubr.f32.mxu0 %v4240_v4  ;;  %v78_v5 = vld [vmem:[#allocation5 + $0x20] sm:$0xff]  ;;  %vm3060_vm1 = vmmov 0  }
  0x2a   :  { %153 = vmatpush1.msra.mxu0 %v83_v1  ;;  %v66_v6 = vld [vmem:[#allocation7] sm:$0xff]  ;;  %v77_v7 = vld [vmem:[#allocation5 + $0x18] sm:$0xff]  ;;  %v75_v8 = vld [vmem:[#allocation5 + $0x8] sm:$0xff] }
  0x2b   :  { %154 = vmatprep.subr.mxu0 %v81_v2  ;;  %2535 = vmatprep.mubr.msk.f32.mxu1 %vm103_vm0, %v66_v6  ;;  %v74_v9 = vld [vmem:[#allocation5] sm:$0xff]  ;;  %v3108_v10 = vld [vmem:[#allocation6 + $0x170] sm:$0xff]  ;;  %v3110_v11 = vld [vmem:[#allocation6 + $0x168] sm:$0xff] }
  0x2c   :  { %155 = vmatpush1.msra.mxu0 %v80_v3  ;;  %4349 = vst [vmem:[#allocation23_spill] sm:$0xff] %v3108_v10  ;;  %v3112_v12 = vld [vmem:[#allocation6 + $0x158] sm:$0xff]  ;;  %v3116_v14 = vld [vmem:[#allocation6 + $0x150] sm:$0xff]  ;;  %v67_v15 = vld [vmem:[#allocation7 + $0x8] sm:$0xff] }
  0x2d   :  { %156 = vmatprep.subr.mxu0 %v78_v5  ;;  %v85_v13 = vld [vmem:[#allocation5 + $0x58] sm:$0xff]  ;;  %v3120_v16 = vld [vmem:[#allocation6 + $0x140] sm:$0xff]  ;;  %v3126_v18 = vld [vmem:[#allocation6 + $0x128] sm:$0xff] }
  0x2e   :  { %157 = vmatpush1.msra.mxu0 %v77_v7  ;;  %v3123_v17 = vld [vmem:[#allocation6 + $0x138] sm:$0xff]  ;;  %2527 = vmatprep.subr.mxu1 %v85_v13  ;;  %v82_v19 = vld [vmem:[#allocation5 + $0x40] sm:$0xff]  ;;  %v68_v21 = vld [vmem:[#allocation7 + $0x10] sm:$0xff] }
  0x2f   :  { %158 = vmatprep.subr.mxu0 %v75_v8  ;;  %2528 = vmatpush3.msra.mxu1 %v85_v13  ;;  %v3130_v20 = vld [vmem:[#allocation6 + $0x120] sm:$0xff]  ;;  %v3134_v22 = vld [vmem:[#allocation6 + $0x110] sm:$0xff]  ;;  %v3137_v23 = vld [vmem:[#allocation6 + $0x108] sm:$0xff] }
  0x30   :  { %159 = vmatpush1.msra.mxu0 %v74_v9  ;;  %2529 = vmatprep.subr.mxu1 %v82_v19  ;;  %v3140_v24 = vld [vmem:[#allocation6 + $0xf8] sm:$0xff]  ;;  %v79_v25 = vld [vmem:[#allocation5 + $0x28] sm:$0xff]  ;;  %v3144_v26 = vld [vmem:[#allocation6 + $0xf0] sm:$0xff] }
  0x31   :  { %2346 = vmatmul.mubr.msk.f32.vlgmr.msra.gmra.mxu0 %vm103_vm0, %v66_v6  ;;  %837 = vmatprep.subr.mxu0 %v3108_v10  ;;  %v69_v27 = vld [vmem:[#allocation7 + $0x18] sm:$0xff]  ;;  %v3148_v28 = vld [vmem:[#allocation6 + $0xe0] sm:$0xff]  ;;  %v3154_v30 = vld [vmem:[#allocation6 + $0xc8] sm:$0xff]  ;;  %v88_v6 = vlaneseq }
  0x32   :  { %198 = vmatprep.mubr.f32.mxu0 %v4240_v4  ;;  %838 = vmatpush1.msra.mxu0 %v3110_v11  ;;  %v3151_v29 = vld [vmem:[#allocation6 + $0xd8] sm:$0xff]  ;;  %4350 = vst [vmem:[#allocation24_spill] sm:$0xff] %v3154_v30  ;;  %v76_v31 = vld [vmem:[#allocation5 + $0x10] sm:$0xff]  ;;  %v3158_v32 = vld [vmem:[#allocation6 + $0xc0] sm:$0xff] }
  0x33   :  { %839 = vmatprep.subr.mxu0 %v3112_v12  ;;  %2530 = vmatpush3.msra.mxu1 %v82_v19  ;;  %4351 = vst [vmem:[#allocation25_spill] sm:$0xff] %v3158_v32  ;;  %v70_v33 = vld [vmem:[#allocation7 + $0x20] sm:$0xff]  ;;  %v3162_v34 = vld [vmem:[#allocation6 + $0xb0] sm:$0xff]  ;;  %v3165_v35 = vld [vmem:[#allocation6 + $0xa8] sm:$0xff]  ;;  %v89_v7 = vshrl.u32 %v88_v6, 7 }
  0x34   :  { %840 = vmatpush1.msra.mxu0 %v3116_v14  ;;  %2531 = vmatprep.subr.mxu1 %v79_v25  ;;  %4352 = vst [vmem:[#allocation26_spill] sm:$0xff] %v3162_v34  ;;  %4353 = vst [vmem:[#allocation27_spill] sm:$0xff] %v3165_v35  ;;  %v3168_v36 = vld [vmem:[#allocation6 + $0x98] sm:$0xff]  ;;  %v3172_v37 = vld [vmem:[#allocation6 + $0x90] sm:$0xff] }
  0x35   :  { %2347 = vmatmul.mubr.msk.f32.gmra.mxu0 %vm103_vm0, %v67_v15  ;;  %841 = vmatprep.subr.mxu0 %v3120_v16  ;;  %4354 = vst [vmem:[#allocation28_spill] sm:$0xff] %v3168_v36  ;;  %4355 = vst [vmem:[#allocation29_spill] sm:$0xff] %v3172_v37  ;;  %v71_v38 = vld [vmem:[#allocation7 + $0x28] sm:$0xff]  ;;  %v3176_v39 = vld [vmem:[#allocation6 + $0x80] sm:$0xff]  ;;  %v90_v9 = vsub.s32 0, %v89_v7  ;;  %v94_v19 = vsub.s32 1, %v89_v7 }
  0x36   :  { %204 = vmatprep.mubr.f32.mxu0 %v4240_v4  ;;  %842 = vmatpush1.msra.mxu0 %v3123_v17  ;;  %4356 = vst [vmem:[#allocation30_spill] sm:$0xff] %v3176_v39  ;;  %v3180_v40 = vld [vmem:[#allocation6 + $0x78] sm:$0xff]  ;;  %v3183_v41 = vld [vmem:[#allocation6 + $0x68] sm:$0xff]  ;;  %v3188_v42 = vld [vmem:[#allocation6 + $0x60] sm:$0xff] }
  0x37   :  { %843 = vmatprep.subr.mxu0 %v3126_v18  ;;  %2532 = vmatpush3.msra.mxu1 %v79_v25  ;;  %4357 = vst [vmem:[#allocation31_spill] sm:$0xff] %v3180_v40  ;;  %4358 = vst [vmem:[#allocation32_spill] sm:$0xff] %v3183_v41  ;;  %v72_v43 = vld [vmem:[#allocation7 + $0x30] sm:$0xff]  ;;  %v3196_v45 = vld [vmem:[#allocation6 + $0x48] sm:$0xff] }
  0x38   :  { %844 = vmatpush1.msra.mxu0 %v3130_v20  ;;  %2533 = vmatprep.subr.mxu1 %v76_v31  ;;  %4359 = vst [vmem:[#allocation33_spill] sm:$0xff] %v3188_v42  ;;  %v3192_v44 = vld [vmem:[#allocation6 + $0x50] sm:$0xff]  ;;  %4361 = vst [vmem:[#allocation35_spill] sm:$0xff] %v3196_v45  ;;  %v3199_v46 = vld [vmem:[#allocation6 + $0x38] sm:$0xff] }
  0x39   :  { %2348 = vmatmul.mubr.msk.f32.gmra.mxu0 %vm103_vm0, %v68_v21  ;;  %845 = vmatprep.subr.mxu0 %v3134_v22  ;;  %4360 = vst [vmem:[#allocation34_spill] sm:$0xff] %v3192_v44  ;;  %4362 = vst [vmem:[#allocation36_spill] sm:$0xff] %v3199_v46  ;;  %v3204_v47 = vld [vmem:[#allocation6 + $0x30] sm:$0xff]  ;;  %v73_v48 = vld [vmem:[#allocation7 + $0x38] sm:$0xff] }
  0x3a   :  { %210 = vmatprep.mubr.f32.mxu0 %v4240_v4  ;;  %846 = vmatpush1.msra.mxu0 %v3137_v23  ;;  %4363 = vst [vmem:[#allocation37_spill] sm:$0xff] %v3204_v47  ;;  %v3208_v49 = vld [vmem:[#allocation6 + $0x20] sm:$0xff]  ;;  %v3212_v50 = vld [vmem:[#allocation6 + $0x18] sm:$0xff]  ;;  %v3215_v51 = vld [vmem:[#allocation6 + $0x8] sm:$0xff] }
  0x3b   :  { %847 = vmatprep.subr.mxu0 %v3140_v24  ;;  %2534 = vmatpush3.msra.mxu1 %v76_v31  ;;  %4364 = vst [vmem:[#allocation38_spill] sm:$0xff] %v3208_v49  ;;  %4365 = vst [vmem:[#allocation39_spill] sm:$0xff] %v3212_v50  ;;  %v3220_v52 = vld [vmem:[#allocation6] sm:$0xff]  ;;  %v3224_v53 = vld [vmem:[#allocation6 + $0x178] sm:$0xff] }
  0x3c   :  { %848 = vmatpush1.msra.mxu0 %v3144_v26  ;;  %2536 = vmatmul.mubr.msk.f32.vlgmr.msra.gmra.mxu1 %vm103_vm0, %v67_v15  ;;  %4366 = vst [vmem:[#allocation40_spill] sm:$0xff] %v3215_v51  ;;  %4367 = vst [vmem:[#allocation41_spill] sm:$0xff] %v3220_v52  ;;  %v3230_v54 = vld [vmem:[#allocation6 + $0x160] sm:$0xff]  ;;  %v3235_v55 = vld [vmem:[#allocation6 + $0x148] sm:$0xff] }
  0x3d   :  { %2349 = vmatmul.mubr.msk.f32.gmra.mxu0 %vm103_vm0, %v69_v27  ;;  %849 = vmatprep.subr.mxu0 %v3148_v28  ;;  %v3242_v56 = vld [vmem:[#allocation6 + $0x130] sm:$0xff]  ;;  %v3248_v57 = vld [vmem:[#allocation6 + $0x118] sm:$0xff]  ;;  %v3254_v58 = vld [vmem:[#allocation6 + $0x100] sm:$0xff] }
  0x3e   :  { %216 = vmatprep.mubr.f32.mxu0 %v4240_v4  ;;  %850 = vmatpush1.msra.mxu0 %v3151_v29  ;;  %v3260_v59 = vld [vmem:[#allocation6 + $0xe8] sm:$0xff]  ;;  %v3266_v60 = vld [vmem:[#allocation6 + $0xd0] sm:$0xff]  ;;  %v3272_v61 = vld [vmem:[#allocation6 + $0xb8] sm:$0xff] }
  0x3f   :  { %851 = vmatprep.subr.mxu0 %v3154_v30  ;;  %2538 = vmatprep.mubr.msk.f32.mxu1 %vm103_vm0, %v68_v21  ;;  %4368 = vst [vmem:[#allocation42_spill] sm:$0xff] %v3266_v60  ;;  %4369 = vst [vmem:[#allocation43_spill] sm:$0xff] %v3272_v61  ;;  %v3278_v62 = vld [vmem:[#allocation6 + $0xa0] sm:$0xff]  ;;  %v3284_v63 = vld [vmem:[#allocation6 + $0x88] sm:$0xff] }
  0x40   :  { %852 = vmatpush1.msra.mxu0 %v3158_v32  ;;  %2539 = vmatmul.mubr.msk.f32.gmra.mxu1 %vm103_vm0, %v69_v27  ;;  %4370 = vst [vmem:[#allocation44_spill] sm:$0xff] %v3278_v62  ;;  %4371 = vst [vmem:[#allocation45_spill] sm:$0xff] %v3284_v63  ;;  %v3290_v0 = vld [vmem:[#allocation6 + $0x70] sm:$0xff]  ;;  %v3296_v1 = vld [vmem:[#allocation6 + $0x58] sm:$0xff]  ;;  %v3061_v27 = vmov 1983009808  }
  0x41   :  { %2350 = vmatmul.mubr.msk.f32.gmra.mxu0 %vm103_vm0, %v70_v33  ;;  %853 = vmatprep.subr.mxu0 %v3162_v34  ;;  %4372 = vst [vmem:[#allocation46_spill] sm:$0xff] %v3290_v0  ;;  %4373 = vst [vmem:[#allocation47_spill] sm:$0xff] %v3296_v1  ;;  %v3302_v2 = vld [vmem:[#allocation6 + $0x40] sm:$0xff]  ;;  %v3308_v3 = vld [vmem:[#allocation6 + $0x28] sm:$0xff]  ;;  %v349_v31 = vunpack.c.l.s4 %v3061_v27  ;;  %v98_v27 = vsub.s32 2, %v89_v7 }
  0x42   :  { %222 = vmatprep.mubr.f32.mxu0 %v4240_v4  ;;  %854 = vmatpush1.msra.mxu0 %v3165_v35  ;;  %4374 = vst [vmem:[#allocation48_spill] sm:$0xff] %v3302_v2  ;;  %4375 = vst [vmem:[#allocation49_spill] sm:$0xff] %v3308_v3  ;;  %v3314_v5 = vld [vmem:[#allocation6 + $0x10] sm:$0xff]  ;;  %v86_v13 = vld [vmem:[%s4237_s3] sm:$0x7] }
  0x43   :  { %855 = vmatprep.subr.mxu0 %v3168_v36  ;;  %2541 = vmatprep.mubr.msk.f32.mxu1 %vm103_vm0, %v70_v33  ;;  %4376 = vst [vmem:[#allocation50_spill] sm:$0xff] %v3314_v5  ;;  %v3367_v25 = vrot.slane %v86_v13, %v90_v9  ;;  %v3062_v9 = vmov 1934713408  }
  0x44   :  { %856 = vmatpush1.msra.mxu0 %v3172_v37  ;;  %2542 = vmatmul.mubr.msk.f32.gmra.mxu1 %vm103_vm0, %v71_v38 }
  0x45   :  { %2351 = vmatmul.mubr.msk.f32.gmra.mxu0 %vm103_vm0, %v71_v38  ;;  %857 = vmatprep.subr.mxu0 %v3176_v39  ;;  %v3369_v38 = vrot.slane %v86_v13, %v94_v19 }
  0x46   :  { %228 = vmatprep.mubr.f32.mxu0 %v4240_v4  ;;  %858 = vmatpush1.msra.mxu0 %v3180_v40 }
  0x47   :  { %859 = vmatprep.subr.mxu0 %v3183_v41  ;;  %2544 = vmatprep.mubr.msk.f32.mxu1 %vm103_vm0, %v72_v43 }
  0x48   :  { %860 = vmatpush1.msra.mxu0 %v3188_v42  ;;  %2547 = vmatprep.subr.mxu1 %v4240_v4 }
  0x49   :  { %2352 = vmatmul.mubr.msk.f32.gmra.mxu0 %vm103_vm0, %v72_v43  ;;  %861 = vmatprep.subr.mxu0 %v3192_v44 }
  0x4a   :  { %234 = vmatprep.mubr.f32.mxu0 %v4240_v4  ;;  %862 = vmatpush1.msra.mxu0 %v3196_v45 }
  0x4b   :  { %863 = vmatprep.subr.mxu0 %v3199_v46  ;;  %2545 = vmatmul.mubr.msk.f32.gmra.mxu1 %vm103_vm0, %v73_v48 }
  0x4c   :  { %864 = vmatpush1.msra.mxu0 %v3204_v47  ;;  %2548 = vmatpush3.msra.mxu1 %v3224_v53 }
  0x4d   :  { %2353 = vmatmul.mubr.msk.f32.gmra.mxu0 %vm103_vm0, %v73_v48  ;;  %865 = vmatprep.subr.mxu0 %v3208_v49 }
  0x4e   :  { %866 = vmatpush1.msra.mxu0 %v3212_v50  ;;  %901 = vmatprep.mubr.f32.mxu0 %v4240_v4 }
  0x4f   :  { %867 = vmatprep.subr.mxu0 %v3215_v51  ;;  %2549 = vmatprep.subr.mxu1 %v4240_v4 }
  0x50   :  { %868 = vmatpush1.msra.mxu0 %v3220_v52  ;;  %2579 = vmatprep.mubr.msk.f32.mxu1 %vm3060_vm1, %v4240_v4 }
  0x51   :  { %902 = vmatmul.mubr.f32.vlgmr.msra.gmra.mxu0 %v4240_v4  ;;  %2550 = vmatpush3.msra.mxu1 %v3230_v54 }
  0x52   :  { %1004 = vmatprep.subr.mxu0 %v3108_v10  ;;  %2551 = vmatprep.subr.mxu1 %v4240_v4 }
  0x53   :  { %1005 = vmatpush1.msra.mxu0 %v3110_v11  ;;  %2552 = vmatpush3.msra.mxu1 %v3235_v55 }
  0x54   :  { %1006 = vmatprep.subr.mxu0 %v3112_v12  ;;  %2553 = vmatprep.subr.mxu1 %v4240_v4 }
  0x55   :  { %1007 = vmatpush1.msra.mxu0 %v3116_v14  ;;  %2554 = vmatpush3.msra.mxu1 %v3242_v56 }
  0x56   :  { %1008 = vmatprep.subr.mxu0 %v3120_v16  ;;  %2555 = vmatprep.subr.mxu1 %v4240_v4 }
  0x57   :  { %1009 = vmatpush1.msra.mxu0 %v3123_v17  ;;  %2556 = vmatpush3.msra.mxu1 %v3248_v57 }
  0x58   :  { %1010 = vmatprep.subr.mxu0 %v3126_v18  ;;  %2557 = vmatprep.subr.mxu1 %v4240_v4 }
  0x59   :  { %1011 = vmatpush1.msra.mxu0 %v3130_v20  ;;  %2558 = vmatpush3.msra.mxu1 %v3254_v58 }
  0x5a   :  { %1012 = vmatprep.subr.mxu0 %v3134_v22  ;;  %2559 = vmatprep.subr.mxu1 %v4240_v4 }
  0x5b   :  { %1013 = vmatpush1.msra.mxu0 %v3137_v23  ;;  %2560 = vmatpush3.msra.mxu1 %v3260_v59 }
  0x5c   :  { %1014 = vmatprep.subr.mxu0 %v3140_v24  ;;  %2561 = vmatprep.subr.mxu1 %v4240_v4 }
  0x5d   :  { %1015 = vmatpush1.msra.mxu0 %v3144_v26  ;;  %2562 = vmatpush3.msra.mxu1 %v3266_v60 }
  0x5e   :  { %1016 = vmatprep.subr.mxu0 %v3148_v28  ;;  %2563 = vmatprep.subr.mxu1 %v4240_v4 }
  0x5f   :  { %1017 = vmatpush1.msra.mxu0 %v3151_v29  ;;  %2564 = vmatpush3.msra.mxu1 %v3272_v61 }
  0x60   :  { %1018 = vmatprep.subr.mxu0 %v3154_v30  ;;  %2565 = vmatprep.subr.mxu1 %v4240_v4 }
  0x61   :  { %1019 = vmatpush1.msra.mxu0 %v3158_v32  ;;  %2566 = vmatpush3.msra.mxu1 %v3278_v62 }
  0x62   :  { %1020 = vmatprep.subr.mxu0 %v3162_v34  ;;  %2567 = vmatprep.subr.mxu1 %v4240_v4 }
  0x63   :  { %1021 = vmatpush1.msra.mxu0 %v3165_v35  ;;  %2568 = vmatpush3.msra.mxu1 %v3284_v63 }
  0x64   :  { %1022 = vmatprep.subr.mxu0 %v3168_v36  ;;  %2569 = vmatprep.subr.mxu1 %v4240_v4 }
  0x65   :  { %1023 = vmatpush1.msra.mxu0 %v3172_v37  ;;  %2570 = vmatpush3.msra.mxu1 %v3290_v0 }
  0x66   :  { %1024 = vmatprep.subr.mxu0 %v3176_v39  ;;  %2571 = vmatprep.subr.mxu1 %v4240_v4 }
  0x67   :  { %1025 = vmatpush1.msra.mxu0 %v3180_v40  ;;  %2572 = vmatpush3.msra.mxu1 %v3296_v1 }
  0x68   :  { %1026 = vmatprep.subr.mxu0 %v3183_v41  ;;  %2573 = vmatprep.subr.mxu1 %v4240_v4 }
  0x69   :  { %1027 = vmatpush1.msra.mxu0 %v3188_v42  ;;  %2574 = vmatpush3.msra.mxu1 %v3302_v2  ;;  %v3381_v42 = vrot.slane %v86_v13, %v98_v27 }
  0x6a   :  { %1028 = vmatprep.subr.mxu0 %v3192_v44  ;;  %2575 = vmatprep.subr.mxu1 %v4240_v4 }
  0x6b   :  { %1029 = vmatpush1.msra.mxu0 %v3196_v45  ;;  %2576 = vmatpush3.msra.mxu1 %v3308_v3 }
  0x6c   :  { %1030 = vmatprep.subr.mxu0 %v3199_v46  ;;  %2577 = vmatprep.subr.mxu1 %v4240_v4 }
  0x6d   :  { %1031 = vmatpush1.msra.mxu0 %v3204_v47  ;;  %2578 = vmatpush3.msra.mxu1 %v3314_v5 }
  0x6e   :  { %1032 = vmatprep.subr.mxu0 %v3208_v49  ;;  %2580 = vmatmul.mubr.f32.vlgmr.msra.gmra.mxu1 %v4240_v4 }
  0x6f   :  { %2582 = vmatprep.subr.mxu1 %v4240_v4  ;;  %1033 = vmatpush1.msra.mxu0 %v3212_v50  ;;  %v413_v50 = vunpack.c.l.s4 %v3062_v9 }
  0x70   :  { %2583 = vmatpush3.msra.mxu1 %v3224_v53  ;;  %1034 = vmatprep.subr.mxu0 %v3215_v51 }
  0x71   :  { %2584 = vmatprep.subr.mxu1 %v4240_v4  ;;  %1035 = vmatpush1.msra.mxu0 %v3220_v52  ;;  %v414_v44 = vunpack.c.0.s8 %v413_v50 }
  0x72   :  { %2585 = vmatpush3.msra.mxu1 %v3230_v54  ;;  %1068 = vmatprep.mubr.f32.mxu0 %v4240_v4 }
  0x73   :  { %2586 = vmatprep.subr.mxu1 %v4240_v4  ;;  %2614 = vmatprep.mubr.msk.f32.mxu1 %vm3060_vm1, %v4240_v4 }
  0x74   :  { %2587 = vmatpush3.msra.mxu1 %v3235_v55  ;;  %1172 = vmatprep.subr.mxu0 %v3108_v10 }
  0x75   :  { %2588 = vmatprep.subr.mxu1 %v4240_v4 }
  0x76   :  { %2589 = vmatpush3.msra.mxu1 %v3242_v56 }
  0x77   :  { %2590 = vmatprep.subr.mxu1 %v4240_v4 }
  0x78   :  { %2591 = vmatpush3.msra.mxu1 %v3248_v57 }
  0x79   :  { %2592 = vmatprep.subr.mxu1 %v4240_v4 }
  0x7a   :  { %2593 = vmatpush3.msra.mxu1 %v3254_v58 }
  0x7b   :  { %2594 = vmatprep.subr.mxu1 %v4240_v4 }
  0x7c   :  { %2595 = vmatpush3.msra.mxu1 %v3260_v59 }
  0x7d   :  { %2596 = vmatprep.subr.mxu1 %v4240_v4 }
  0x7e   :  { %2597 = vmatpush3.msra.mxu1 %v3266_v60 }
  0x7f   :  { %2598 = vmatprep.subr.mxu1 %v4240_v4 }
  0x80   :  { %2599 = vmatpush3.msra.mxu1 %v3272_v61 }
  0x81   :  { %2600 = vmatprep.subr.mxu1 %v4240_v4 }
  0x82   :  { %2601 = vmatpush3.msra.mxu1 %v3278_v62 }
  0x83   :  { %2602 = vmatprep.subr.mxu1 %v4240_v4 }
  0x84   :  { %2603 = vmatpush3.msra.mxu1 %v3284_v63 }
  0x85   :  { %2604 = vmatprep.subr.mxu1 %v4240_v4 }
  0x86   :  { %2605 = vmatpush3.msra.mxu1 %v3290_v0 }
  0x87   :  { %2606 = vmatprep.subr.mxu1 %v4240_v4 }
  0x88   :  { %2607 = vmatpush3.msra.mxu1 %v3296_v1 }
  0x89   :  { %2608 = vmatprep.subr.mxu1 %v4240_v4 }
  0x8a   :  { %2609 = vmatpush3.msra.mxu1 %v3302_v2 }
  0x8b   :  { %2610 = vmatprep.subr.mxu1 %v4240_v4 }
  0x8c   :  { %2611 = vmatpush3.msra.mxu1 %v3308_v3 }
  0x8d   :  { %2612 = vmatprep.subr.mxu1 %v4240_v4 }
  0x8e   :  { %2613 = vmatpush3.msra.mxu1 %v3314_v5 }
  0x8f   :  { %2617 = vmatprep.subr.mxu1 %v4240_v4  ;;  %v350_v4 = vunpack.c.0.s8 %v349_v31 }
  0x91   :  { %v3375_v2 = vsub.s32 %v350_v4, %v89_v7 }
  0x93   :  { %4377 = vst [vmem:[#allocation51_spill] sm:$0xff] %v3375_v2 }
  0xf1   :  { %v194_v8 = vpop.f32.mrf.mxu0 }
  0xf2   :  { %v195_v48 = vadd.f32 %v194_v8, %v3367_v25 }
  0xf3   :  { %v196_v15 = vpop.f32.mrf.mxu0 }
  0xf4   :  { %v197_v5 = vadd.f32 %v196_v15, %v3369_v38 }
  0xf5   :  { %v200_v21 = vpop.f32.mrf.mxu0 }
  0xf6   :  { %v201_v19 = vadd.f32 %v200_v21, %v3367_v25 }
  0xf7   :  { %v202_v33 = vpop.f32.mrf.mxu0 }
  0xf8   :  { %v203_v31 = vadd.f32 %v202_v33, %v3369_v38 }
  0xf9   :  { %v206_v43 = vpop.f32.mrf.mxu0 }
  0xfa   :  { %v207_v6 = vadd.f32 %v206_v43, %v3367_v25 }
  0xfb   :  { %v208_v10 = vpop.f32.mrf.mxu0 }
  0xfc   :  { %v347_v52 = vcombine.high %v195_v48, %v207_v6  ;;  %v209_v51 = vadd.f32 %v208_v10, %v3369_v38  ;;  %v346_v47 = vcombine.low %v195_v48, %v207_v6 }
  0xfd   :  { %v212_v3 = vpop.f32.mrf.mxu0 }
  0xfe   :  { %v483_v49 = vcombine.high %v197_v5, %v209_v51  ;;  %v213_v8 = vadd.f32 %v212_v3, %v3367_v25  ;;  %v482_v46 = vcombine.low %v197_v5, %v209_v51  ;;  %v354_v4 = vrot.slane %v346_v47, %v3375_v2  ;;  %v2537_v5 = vpop.f32.mrf.mxu1 }
  0xff   :  { %v214_v43 = vpop.f32.mrf.mxu0  ;;  %v3385_v21 = vrot.slane %v347_v52, %v3375_v2 }
 0x100   :  { %v215_v15 = vadd.f32 %v214_v43, %v3369_v38  ;;  %v362_v1 = vcombine.low %v201_v19, %v213_v8  ;;  %v363_v10 = vcombine.high %v201_v19, %v213_v8  ;;  %v490_v48 = vrot.slane %v482_v46, %v3375_v2  ;;  %v307_v52 = vpop.f32.mrf.mxu1 }
 0x101   :  { %v218_v45 = vpop.f32.mrf.mxu0  ;;  %v3397_v13 = vrot.slane %v483_v49, %v3375_v2  ;;  %v313_v8 = vadd.f32 %v2537_v5, %v3381_v42  ;;  %v3404_v43 = vsub.s32 %v414_v44, %v89_v7  ;;  %v308_v5 = vadd.f32 %v307_v52, %v3381_v42 }
 0x102   :  { %v498_v9 = vcombine.low %v203_v31, %v215_v15  ;;  %v499_v0 = vcombine.high %v203_v31, %v215_v15  ;;  %v370_v3 = vrot.slane %v362_v1, %v3375_v2  ;;  %v3389_v33 = vrot.slane %v363_v10, %v3375_v2 }
 0x103   :  { %v220_v51 = vpop.f32.mrf.mxu0  ;;  %4378 = vst [vmem:[#allocation52_spill] sm:$0xff] %v3404_v43  ;;  %v3409_v10 = vadd.f32 %v218_v45, %v3367_v25 }
 0x104   :  { %v506_v50 = vrot.slane %v498_v9, %v3375_v2  ;;  %v3394_v6 = vrot.slane %v499_v0, %v3375_v2  ;;  %v411_v27 = vcombine.high %v354_v4, %v370_v3  ;;  %v426_v1 = vcombine.low %v3385_v21, %v3389_v33  ;;  %v2540_v0 = vpop.f32.mrf.mxu1 }
 0x105   :  { %v224_v47 = vpop.f32.mrf.mxu0  ;;  %v410_v15 = vcombine.low %v354_v4, %v370_v3  ;;  %v323_v9 = vadd.f32 %v2540_v0, %v3381_v42  ;;  %v3413_v41 = vadd.f32 %v220_v51, %v3369_v38 }
 0x106   :  { %v547_v46 = vcombine.high %v490_v48, %v506_v50  ;;  %v562_v49 = vcombine.low %v3397_v13, %v3394_v6  ;;  %v317_v63 = vpop.f32.mrf.mxu1  ;;  %v546_v44 = vcombine.low %v490_v48, %v506_v50  ;;  %v225_v0 = vadd.f32 %v224_v47, %v3367_v25 }
 0x107   :  { %v226_v31 = vpop.f32.mrf.mxu0  ;;  %v634_v3 = vcombine.low %v313_v8, %v323_v9  ;;  %v635_v40 = vcombine.high %v313_v8, %v323_v9  ;;  %v318_v45 = vadd.f32 %v317_v63, %v3381_v42  ;;  %v3424_v62 = vrot.slane %v410_v15, %v3404_v43 }
 0x108   :  { %v2543_v51 = vpop.f32.mrf.mxu1  ;;  %v3427_v52 = vrot.slane %v411_v27, %v3404_v43  ;;  %v3430_v48 = vrot.slane %v426_v1, %v3404_v43  ;;  %v227_v50 = vadd.f32 %v226_v31, %v3369_v38  ;;  %v3442_v1 = vrot.slane %v546_v44, %v3404_v43 }
 0x109   :  { %v230_v19 = vpop.f32.mrf.mxu0  ;;  %v642_v15 = vrot.slane %v634_v3, %v3375_v2  ;;  %v618_v9 = vcombine.low %v308_v5, %v318_v45  ;;  %v619_v27 = vcombine.high %v308_v5, %v318_v45  ;;  %v3447_v37 = vrot.slane %v635_v40, %v3375_v2 }
 0x10a   :  { %v3419_v4 = vadd.f32 %v230_v19, %v3367_v25  ;;  %4379 = vst [vmem:[#allocation53_spill] sm:$0xff] %v3430_v48  ;;  %v327_v7 = vpop.f32.mrf.mxu1  ;;  %v3450_v63 = vrot.slane %v547_v46, %v3404_v43  ;;  %v333_v46 = vadd.f32 %v2543_v51, %v3381_v42 }
 0x10b   :  { %v232_v39 = vpop.f32.mrf.mxu0  ;;  %v626_v44 = vrot.slane %v618_v9, %v3375_v2  ;;  %v3460_v36 = vrot.slane %v619_v27, %v3375_v2 }
 0x10c   :  { %v378_v19 = vcombine.low %v3409_v10, %v3419_v4  ;;  %v3438_v47 = vadd.f32 %v232_v39, %v3369_v38  ;;  %v3453_v39 = vrot.slane %v562_v49, %v3404_v43  ;;  %v328_v49 = vadd.f32 %v327_v7, %v3381_v42  ;;  %v2546_v61 = vpop.f32.mrf.mxu1 }
 0x10d   :  { %v236_v8 = vpop.f32.mrf.mxu0  ;;  %v682_v60 = vcombine.low %v626_v44, %v642_v15  ;;  %v683_v32 = vcombine.high %v626_v44, %v642_v15  ;;  %v698_v9 = vcombine.low %v3460_v36, %v3447_v37  ;;  %v699_v27 = vcombine.high %v3460_v36, %v3447_v37 }
 0x10e   :  { %4380 = vst [vmem:[#allocation54_spill] sm:$0xff] %v3453_v39  ;;  %v514_v3 = vcombine.low %v3413_v41, %v3438_v47  ;;  %v237_v5 = vadd.f32 %v236_v8, %v3367_v25  ;;  %v386_v40 = vrot.slane %v378_v19, %v3375_v2  ;;  %v337_v19 = vpop.f32.mrf.mxu1  ;;  %v343_v7 = vadd.f32 %v2546_v61, %v3381_v42 }
 0x10f   :  { %v238_v45 = vpop.f32.mrf.mxu0 }
 0x110   :  { %v239_v31 = vadd.f32 %v238_v45, %v3369_v38  ;;  %v394_v35 = vcombine.low %v225_v0, %v237_v5  ;;  %v395_v34 = vcombine.high %v225_v0, %v237_v5  ;;  %v522_v38 = vrot.slane %v514_v3, %v3375_v2 }
 0x111   :  { %v338_v45 = vadd.f32 %v337_v19, %v3381_v42  ;;  %v666_v37 = vcombine.low %v333_v46, %v343_v7  ;;  %v667_v5 = vcombine.high %v333_v46, %v343_v7 }
 0x112   :  { %v530_v25 = vcombine.low %v227_v50, %v239_v31  ;;  %v531_v8 = vcombine.high %v227_v50, %v239_v31  ;;  %v402_v51 = vrot.slane %v394_v35, %v3375_v2  ;;  %v409_v0 = vrot.slane %v395_v34, %v3375_v2 }
 0x113   :  { %v3477_v50 = vrot.slane %v682_v60, %v3404_v43  ;;  %v3480_v31 = vrot.slane %v683_v32, %v3404_v43  ;;  %v650_v3 = vcombine.low %v328_v49, %v338_v45  ;;  %v651_v35 = vcombine.high %v328_v49, %v338_v45 }
 0x114   :  { %v538_v15 = vrot.slane %v530_v25, %v3375_v2  ;;  %v442_v36 = vcombine.low %v386_v40, %v402_v51  ;;  %v443_v30 = vcombine.high %v386_v40, %v402_v51  ;;  %v674_v34 = vrot.slane %v666_v37, %v3375_v2 }
 0x115   :  { %v681_v25 = vrot.slane %v667_v5, %v3375_v2  ;;  %v658_v60 = vrot.slane %v650_v3, %v3375_v2  ;;  %v665_v19 = vrot.slane %v651_v35, %v3375_v2  ;;  %v545_v45 = vrot.slane %v531_v8, %v3375_v2 }
 0x116   :  { %v578_v44 = vcombine.low %v522_v38, %v538_v15  ;;  %v579_v61 = vcombine.high %v522_v38, %v538_v15  ;;  %v3483_v42 = vrot.slane %v442_v36, %v3404_v43  ;;  %v3493_v46 = vrot.slane %v443_v30, %v3404_v43  ;;  %v903_v15 = vpop.f32.mrf.mxu0 }
 0x117   :  { %v714_v38 = vcombine.low %v658_v60, %v674_v34  ;;  %v715_v51 = vcombine.high %v658_v60, %v674_v34  ;;  %v730_v36 = vcombine.low %v665_v19, %v681_v25  ;;  %v731_v37 = vcombine.high %v665_v19, %v681_v25 }
 0x118   :  { %v3489_v32 = vrot.slane %v578_v44, %v3404_v43  ;;  %v3496_v40 = vrot.slane %v579_v61, %v3404_v43  ;;  %v474_v49 = vcombine.low %v3424_v62, %v3483_v42  ;;  %v475_v7 = vcombine.high %v3424_v62, %v3483_v42 }
 0x119   :  { %v3506_v3 = vrot.slane %v714_v38, %v3404_v43  ;;  %v3511_v35 = vrot.slane %v715_v51, %v3404_v43  ;;  %v4381_v8 = vcombine.high %v3409_v10, %v3419_v4  ;;  %v4382_v19 = vcombine.high %v3413_v41, %v3438_v47 }
 0x11a   :  { %v978_v5 = vadd.f32 %v903_v15, %v474_v49  ;;  %v4384_v60 = vcombine.high %v3385_v21, %v3389_v33  ;;  %v3543_v47 = vrot.slane %v730_v36, %v3404_v43  ;;  %v610_v25 = vcombine.low %v3442_v1, %v3489_v32 }
 0x11b   :  { %v393_v61 = vrot.slane %v4381_v8, %v3375_v2  ;;  %v529_v49 = vrot.slane %v4382_v19, %v3375_v2  ;;  %v3534_v8 = vrot.slane %v698_v9, %v3404_v43  ;;  %v3551_v9 = vrot.slane %v699_v27, %v3404_v43 }
 0x11c   :  { %v2363_v38 = vmul.f32 -1.442695, %v978_v5  ;;  %v3540_v41 = vrot.slane %v4384_v60, %v3404_v43  ;;  %4386 = vst [vmem:[#allocation57_spill] sm:$0xff] %v3543_v47  ;;  %v3554_v10 = vrot.slane %v731_v37, %v3404_v43  ;;  %v905_v37 = vpop.f32.mrf.mxu0  ;;  %v4426_v62 = vcombine.high %v3477_v50, %v3506_v3 }
 0x11d   :  { %v458_v15 = vcombine.low %v393_v61, %v409_v0  ;;  %4383 = vst [vmem:[#allocation55_spill] sm:$0xff] %v3534_v8  ;;  %v594_v5 = vcombine.low %v529_v49, %v545_v45  ;;  %v459_v19 = vcombine.high %v393_v61, %v409_v0  ;;  %4388 = vst [vmem:[#allocation59_spill] sm:$0xff] %v3551_v9 }
 0x11e   :  { %4385 = vst [vmem:[#allocation56_spill] sm:$0xff] %v3540_v41  ;;  %2837 = vpow2.f32 %v2363_v38  ;;  %4389 = vst [vmem:[#allocation60_spill] sm:$0xff] %v3554_v10  ;;  %v595_v60 = vcombine.high %v529_v49, %v545_v45  ;;  %v4392_v0 = vcombine.high %v3397_v13, %v3394_v6  ;;  %v746_v49 = vcombine.low %v3477_v50, %v3506_v3  ;;  %v3693_v50 = vld [vmem:[#allocation6 + $0x158] sm:$0xff]  ;;  %v3697_v3 = vld [vmem:[#allocation6 + $0x150] sm:$0xff] }
 0x11f   :  { %v3548_v4 = vrot.slane %v458_v15, %v3404_v43  ;;  %v3559_v33 = vrot.slane %v594_v5, %v3404_v43  ;;  %v3564_v36 = vrot.slane %v459_v19, %v3404_v43  ;;  %v985_v15 = vadd.f32 %v905_v37, %v610_v25 }
 0x120   :  { %v3584_v27 = vrot.slane %v4392_v0, %v3404_v43  ;;  %v3587_v45 = vrot.slane %v595_v60, %v3404_v43  ;;  %v3598_v0 = vld [vmem:[%s4238_s4] ss:$0 sm:$0xff]  ;;  %v4425_v9 = vcombine.high %v3442_v1, %v3489_v32 }
 0x121   :  { %4387 = vst [vmem:[#allocation58_spill] sm:$0xff] %v3548_v4  ;;  %4390 = vst [vmem:[#allocation61_spill] sm:$0xff] %v3559_v33  ;;  %v2364_v21 = vmul.f32 -1.442695, %v985_v15 }
 0x122   :  { %4391 = vst [vmem:[#allocation62_spill] sm:$0xff] %v3564_v36  ;;  %4393 = vst [vmem:[#allocation63_spill] sm:$0xff] %v3584_v27 }
 0x123   :  { %4394 = vst [vmem:[#allocation64_spill] sm:$0xff] %v3587_v45  ;;  %2839 = vpow2.f32 %v2364_v21 }
 0x12b   :  { %v2838_v38 = vpop.eup %2837 }
 0x12c   :  { %v982_v61 = vadd.f32 1.0, %v2838_v38 }
 0x12e   :  { %2841 = vrcp.f32 %v982_v61  ;;  %v974_v6 = vpop.f32.mrf.mxu1 }
 0x12f   :  { %v992_v25 = vadd.f32 %v3598_v0, %v974_v6  ;;  %v4396_v6 = vmov 0.0  }
 0x130   :  { %v2581_v13 = vpop.f32.mrf.mxu1  ;;  %v2840_v37 = vpop.eup %2839 }
 0x131   :  { %v989_v15 = vadd.f32 1.0, %v2840_v37  ;;  %v4414_v37 = vld [vmem:[#allocation47_spill] sm:$0xff] }
 0x13b   :  { %v2842_v60 = vpop.eup %2841 }
 0x13c   :  { %v993_v19 = vmul.f32 %v2842_v60, %v992_v25  ;;  %v4413_v25 = vld [vmem:[#allocation35_spill] sm:$0xff]  ;;  %v4415_v60 = vld [vmem:[#allocation36_spill] sm:$0xff] }
 0x13e   :  { %v994_v5 = vadd.f32 %v993_v19, %v746_v49  ;;  %v4411_v19 = vld [vmem:[#allocation46_spill] sm:$0xff] }
 0x13f   :  { %v4412_v49 = vld [vmem:[#allocation34_spill] sm:$0xff] }
 0x140   :  { %2843 = vtanh.f32 %v994_v5  ;;  %v4410_v5 = vld [vmem:[#allocation33_spill] sm:$0xff] }
 0x141   :  { %2845 = vrcp.f32 %v989_v15  ;;  %v4416_v15 = vld [vmem:[#allocation37_spill] sm:$0xff] }
 0x14d   :  { %v2844_v21 = vpop.eup %2843 }
 0x14e   :  { %v996_v61 = vsub.f32 0.0, %v2844_v21  ;;  %v2846_v38 = vpop.eup %2845 }
 0x150   :  { %v997_v13 = vmul.f32 %v2846_v38, %v996_v61  ;;  %v4418_v61 = vld [vmem:[#allocation38_spill] sm:$0xff]  ;;  %v4419_v38 = vld [vmem:[#allocation39_spill] sm:$0xff] }
 0x152   :  { %v3603_v34 = vadd.f32 %v2844_v21, %v997_v13  ;;  %v4417_v21 = vld [vmem:[#allocation48_spill] sm:$0xff]  ;;  %v4420_v13 = vld [vmem:[#allocation49_spill] sm:$0xff] }
 0x154   :  { %4395 = vst [vmem:[#allocation65_spill] sm:$0xff] %v3603_v34  ;;  %1069 = vmatmul.mubr.f32.vlgmr.msra.gmra.mxu0 %v3603_v34  ;;  %2615 = vmatmul.mubr.f32.vlgmr.msra.gmra.mxu1 %v3603_v34 }
 0x155   :  { %1173 = vmatpush1.msra.mxu0 %v3110_v11  ;;  %2618 = vmatpush3.msra.mxu1 %v3224_v53  ;;  %v4397_v11 = vld [vmem:[#allocation24_spill] sm:$0xff] }
 0x156   :  { %1174 = vmatprep.subr.mxu0 %v3112_v12  ;;  %2619 = vmatprep.subr.mxu1 %v4396_v6  ;;  %v4398_v12 = vld [vmem:[#allocation25_spill] sm:$0xff] }
 0x157   :  { %1175 = vmatpush1.msra.mxu0 %v3116_v14  ;;  %2620 = vmatpush3.msra.mxu1 %v3230_v54  ;;  %v4399_v14 = vld [vmem:[#allocation42_spill] sm:$0xff] }
 0x158   :  { %1176 = vmatprep.subr.mxu0 %v3120_v16  ;;  %2621 = vmatprep.subr.mxu1 %v4396_v6  ;;  %v4400_v16 = vld [vmem:[#allocation26_spill] sm:$0xff] }
 0x159   :  { %1177 = vmatpush1.msra.mxu0 %v3123_v17  ;;  %2622 = vmatpush3.msra.mxu1 %v3235_v55  ;;  %v4401_v17 = vld [vmem:[#allocation27_spill] sm:$0xff] }
 0x15a   :  { %1178 = vmatprep.subr.mxu0 %v3126_v18  ;;  %2623 = vmatprep.subr.mxu1 %v4396_v6  ;;  %v4402_v18 = vld [vmem:[#allocation43_spill] sm:$0xff] }
 0x15b   :  { %1179 = vmatpush1.msra.mxu0 %v3130_v20  ;;  %2624 = vmatpush3.msra.mxu1 %v3242_v56  ;;  %v4403_v20 = vld [vmem:[#allocation28_spill] sm:$0xff] }
 0x15c   :  { %1180 = vmatprep.subr.mxu0 %v3134_v22  ;;  %2625 = vmatprep.subr.mxu1 %v4396_v6  ;;  %v4404_v22 = vld [vmem:[#allocation29_spill] sm:$0xff] }
 0x15d   :  { %1181 = vmatpush1.msra.mxu0 %v3137_v23  ;;  %2626 = vmatpush3.msra.mxu1 %v3248_v57  ;;  %v4405_v23 = vld [vmem:[#allocation44_spill] sm:$0xff] }
 0x15e   :  { %1182 = vmatprep.subr.mxu0 %v3140_v24  ;;  %2627 = vmatprep.subr.mxu1 %v4396_v6  ;;  %v4406_v24 = vld [vmem:[#allocation30_spill] sm:$0xff] }
 0x15f   :  { %1183 = vmatpush1.msra.mxu0 %v3144_v26  ;;  %2628 = vmatpush3.msra.mxu1 %v3254_v58  ;;  %v4407_v26 = vld [vmem:[#allocation31_spill] sm:$0xff] }
 0x160   :  { %1184 = vmatprep.subr.mxu0 %v3148_v28  ;;  %2629 = vmatprep.subr.mxu1 %v4396_v6  ;;  %v4408_v28 = vld [vmem:[#allocation45_spill] sm:$0xff] }
 0x161   :  { %1185 = vmatpush1.msra.mxu0 %v3151_v29  ;;  %2630 = vmatpush3.msra.mxu1 %v3260_v59  ;;  %v4409_v29 = vld [vmem:[#allocation32_spill] sm:$0xff] }
 0x162   :  { %1186 = vmatprep.subr.mxu0 %v4397_v11  ;;  %2631 = vmatprep.subr.mxu1 %v4396_v6  ;;  %v4421_v11 = vld [vmem:[#allocation40_spill] sm:$0xff] }
 0x163   :  { %1187 = vmatpush1.msra.mxu0 %v4398_v12  ;;  %2632 = vmatpush3.msra.mxu1 %v4399_v14  ;;  %v4422_v12 = vld [vmem:[#allocation41_spill] sm:$0xff] }
 0x164   :  { %1188 = vmatprep.subr.mxu0 %v4400_v16  ;;  %2633 = vmatprep.subr.mxu1 %v4396_v6  ;;  %v4423_v16 = vld [vmem:[#allocation50_spill] sm:$0xff] }
 0x165   :  { %1189 = vmatpush1.msra.mxu0 %v4401_v17  ;;  %2634 = vmatpush3.msra.mxu1 %v4402_v18  ;;  %v4424_v17 = vld [vmem:[#allocation23_spill] sm:$0xff] }
 0x166   :  { %1190 = vmatprep.subr.mxu0 %v4403_v20  ;;  %2635 = vmatprep.subr.mxu1 %v4396_v6 }
 0x167   :  { %1191 = vmatpush1.msra.mxu0 %v4404_v22  ;;  %2636 = vmatpush3.msra.mxu1 %v4405_v23 }
 0x168   :  { %1192 = vmatprep.subr.mxu0 %v4406_v24  ;;  %2637 = vmatprep.subr.mxu1 %v4396_v6 }
 0x169   :  { %1193 = vmatpush1.msra.mxu0 %v4407_v26  ;;  %2638 = vmatpush3.msra.mxu1 %v4408_v28 }
 0x16a   :  { %1194 = vmatprep.subr.mxu0 %v4409_v29  ;;  %2639 = vmatprep.subr.mxu1 %v4396_v6 }
 0x16b   :  { %1195 = vmatpush1.msra.mxu0 %v4410_v5  ;;  %2640 = vmatpush3.msra.mxu1 %v4411_v19 }
 0x16c   :  { %1196 = vmatprep.subr.mxu0 %v4412_v49  ;;  %2641 = vmatprep.subr.mxu1 %v4396_v6 }
 0x16d   :  { %1197 = vmatpush1.msra.mxu0 %v4413_v25  ;;  %2642 = vmatpush3.msra.mxu1 %v4414_v37 }
 0x16e   :  { %1198 = vmatprep.subr.mxu0 %v4415_v60  ;;  %2643 = vmatprep.subr.mxu1 %v4396_v6 }
 0x16f   :  { %1199 = vmatpush1.msra.mxu0 %v4416_v15  ;;  %2644 = vmatpush3.msra.mxu1 %v4417_v21 }
 0x170   :  { %1200 = vmatprep.subr.mxu0 %v4418_v61  ;;  %2645 = vmatprep.subr.mxu1 %v4396_v6 }
 0x171   :  { %1201 = vmatpush1.msra.mxu0 %v4419_v38  ;;  %2646 = vmatpush3.msra.mxu1 %v4420_v13 }
 0x172   :  { %1202 = vmatprep.subr.mxu0 %v4421_v11  ;;  %2647 = vmatprep.subr.mxu1 %v4396_v6 }
 0x173   :  { %1203 = vmatpush1.msra.mxu0 %v4422_v12  ;;  %1236 = vmatprep.mubr.f32.mxu0 %v4396_v6 }
 0x174   :  { %2648 = vmatpush3.msra.mxu1 %v4423_v16  ;;  %2649 = vmatprep.mubr.msk.f32.mxu1 %vm3060_vm1, %v4396_v6 }
 0x175   :  { %1340 = vmatprep.subr.mxu0 %v4424_v17  ;;  %2652 = vmatprep.subr.mxu1 %v4396_v6 }
 0x214   :  { %v1070_v44 = vpop.f32.mrf.mxu0  ;;  %v1141_v51 = vpop.f32.mrf.mxu1 }
 0x215   :  { %v1145_v30 = vadd.f32 %v1070_v44, %v475_v7  ;;  %v1159_v47 = vadd.f32 %v3598_v0, %v1141_v51  ;;  %v3689_v44 = vld [vmem:[#allocation6 + $0x168] sm:$0xff]  ;;  %v3701_v51 = vld [vmem:[#allocation6 + $0x140] sm:$0xff] }
 0x216   :  { %v2616_v43 = vpop.f32.mrf.mxu1  ;;  %v1072_v10 = vpop.f32.mrf.mxu0 }
 0x217   :  { %v2365_v2 = vmul.f32 -1.442695, %v1145_v30  ;;  %v1152_v45 = vadd.f32 %v1072_v10, %v4425_v9  ;;  %v3705_v10 = vld [vmem:[#allocation6 + $0x138] sm:$0xff] }
 0x218   :  { %v3737_v9 = vld [vmem:[#allocation6 + $0xd8] sm:$0xff] }
 0x219   :  { %2847 = vpow2.f32 %v2365_v2  ;;  %v2366_v27 = vmul.f32 -1.442695, %v1152_v45 }
 0x21b   :  { %2849 = vpow2.f32 %v2366_v27 }
 0x226   :  { %v2848_v36 = vpop.eup %2847 }
 0x227   :  { %v1149_v41 = vadd.f32 1.0, %v2848_v36  ;;  %v3753_v36 = vld [vmem:[#allocation6 + $0xa8] sm:$0xff] }
 0x228   :  { %v2850_v17 = vpop.eup %2849 }
 0x229   :  { %2851 = vrcp.f32 %v1149_v41  ;;  %v1156_v2 = vadd.f32 1.0, %v2850_v17  ;;  %v3721_v41 = vld [vmem:[#allocation6 + $0x108] sm:$0xff]  ;;  %v3814_v17 = vld [vmem:[#allocation6 + $0x160] sm:$0xff] }
 0x236   :  { %v2852_v8 = vpop.eup %2851 }
 0x237   :  { %v1160_v33 = vmul.f32 %v2852_v8, %v1159_v47  ;;  %v3713_v8 = vld [vmem:[#allocation6 + $0x120] sm:$0xff]  ;;  %v3729_v47 = vld [vmem:[#allocation6 + $0xf0] sm:$0xff] }
 0x239   :  { %v1161_v43 = vadd.f32 %v1160_v33, %v4426_v62  ;;  %v3745_v33 = vld [vmem:[#allocation6 + $0xc0] sm:$0xff]  ;;  %v3820_v62 = vld [vmem:[#allocation6 + $0x148] sm:$0xff] }
 0x23b   :  { %2853 = vtanh.f32 %v1161_v43  ;;  %v3826_v43 = vld [vmem:[#allocation6 + $0x130] sm:$0xff] }
 0x23c   :  { %2855 = vrcp.f32 %v1156_v2  ;;  %v3832_v2 = vld [vmem:[#allocation6 + $0x118] sm:$0xff] }
 0x248   :  { %v2854_v42 = vpop.eup %2853 }
 0x249   :  { %v1163_v1 = vsub.f32 %v3603_v34, %v2854_v42  ;;  %v2856_v32 = vpop.eup %2855  ;;  %v4441_v34 = vcombine.high %v3427_v52, %v3493_v46 }
 0x24b   :  { %v1164_v7 = vmul.f32 %v2856_v32, %v1163_v1  ;;  %v3844_v1 = vld [vmem:[#allocation6 + $0xe8] sm:$0xff]  ;;  %v3850_v32 = vld [vmem:[#allocation6 + $0xd0] sm:$0xff] }
 0x24d   :  { %v3685_v30 = vadd.f32 %v2854_v42, %v1164_v7  ;;  %v3838_v42 = vld [vmem:[#allocation6 + $0x100] sm:$0xff]  ;;  %v3856_v7 = vld [vmem:[#allocation6 + $0xb8] sm:$0xff] }
 0x24f   :  { %4427 = vst [vmem:[#allocation24_spill] sm:$0xff] %v3685_v30  ;;  %1237 = vmatmul.mubr.f32.vlgmr.msra.gmra.mxu0 %v3685_v30  ;;  %2650 = vmatmul.mubr.f32.vlgmr.msra.gmra.mxu1 %v3685_v30 }
 0x250   :  { %1341 = vmatpush1.msra.mxu0 %v3689_v44  ;;  %2653 = vmatpush3.msra.mxu1 %v3224_v53  ;;  %v3709_v53 = vld [vmem:[#allocation6 + $0x128] sm:$0xff] }
 0x251   :  { %1342 = vmatprep.subr.mxu0 %v3693_v50  ;;  %2654 = vmatprep.subr.mxu1 %v4396_v6 }
 0x252   :  { %1343 = vmatpush1.msra.mxu0 %v3697_v3  ;;  %2655 = vmatpush3.msra.mxu1 %v3230_v54  ;;  %v3717_v54 = vld [vmem:[#allocation6 + $0x110] sm:$0xff] }
 0x253   :  { %1344 = vmatprep.subr.mxu0 %v3701_v51  ;;  %2656 = vmatprep.subr.mxu1 %v4396_v6 }
 0x254   :  { %1345 = vmatpush1.msra.mxu0 %v3705_v10  ;;  %2657 = vmatpush3.msra.mxu1 %v3235_v55  ;;  %v3725_v55 = vld [vmem:[#allocation6 + $0xf8] sm:$0xff] }
 0x255   :  { %1346 = vmatprep.subr.mxu0 %v3709_v53  ;;  %2658 = vmatprep.subr.mxu1 %v4396_v6 }
 0x256   :  { %1347 = vmatpush1.msra.mxu0 %v3713_v8  ;;  %2659 = vmatpush3.msra.mxu1 %v3242_v56  ;;  %v3733_v56 = vld [vmem:[#allocation6 + $0xe0] sm:$0xff] }
 0x257   :  { %1348 = vmatprep.subr.mxu0 %v3717_v54  ;;  %2660 = vmatprep.subr.mxu1 %v4396_v6 }
 0x258   :  { %1349 = vmatpush1.msra.mxu0 %v3721_v41  ;;  %2661 = vmatpush3.msra.mxu1 %v3248_v57  ;;  %v3741_v57 = vld [vmem:[#allocation6 + $0xc8] sm:$0xff] }
 0x259   :  { %1350 = vmatprep.subr.mxu0 %v3725_v55  ;;  %2662 = vmatprep.subr.mxu1 %v4396_v6 }
 0x25a   :  { %1351 = vmatpush1.msra.mxu0 %v3729_v47  ;;  %2663 = vmatpush3.msra.mxu1 %v3254_v58  ;;  %v3749_v58 = vld [vmem:[#allocation6 + $0xb0] sm:$0xff] }
 0x25b   :  { %1352 = vmatprep.subr.mxu0 %v3733_v56  ;;  %2664 = vmatprep.subr.mxu1 %v4396_v6 }
 0x25c   :  { %1353 = vmatpush1.msra.mxu0 %v3737_v9  ;;  %2665 = vmatpush3.msra.mxu1 %v3260_v59  ;;  %v3788_v59 = vld [vmem:[#allocation6 + $0x170] sm:$0xff] }
 0x25d   :  { %1354 = vmatprep.subr.mxu0 %v3741_v57  ;;  %2666 = vmatprep.subr.mxu1 %v4396_v6  ;;  %4428 = vst [vmem:[#allocation25_spill] sm:$0xff] %v3788_v59 }
 0x25e   :  { %1355 = vmatpush1.msra.mxu0 %v3745_v33  ;;  %2667 = vmatpush3.msra.mxu1 %v4399_v14  ;;  %v4429_v14 = vcombine.low %v3427_v52, %v3493_v46  ;;  %v4443_v52 = vcombine.high %v3480_v31, %v3511_v35 }
 0x25f   :  { %1356 = vmatprep.subr.mxu0 %v3749_v58  ;;  %2668 = vmatprep.subr.mxu1 %v4396_v6 }
 0x260   :  { %1357 = vmatpush1.msra.mxu0 %v3753_v36  ;;  %2669 = vmatpush3.msra.mxu1 %v4402_v18 }
 0x261   :  { %1358 = vmatprep.subr.mxu0 %v4403_v20  ;;  %2670 = vmatprep.subr.mxu1 %v4396_v6 }
 0x262   :  { %1359 = vmatpush1.msra.mxu0 %v4404_v22  ;;  %2671 = vmatpush3.msra.mxu1 %v4405_v23 }
 0x263   :  { %1360 = vmatprep.subr.mxu0 %v4406_v24  ;;  %2672 = vmatprep.subr.mxu1 %v4396_v6  ;;  %v4430_v24 = vcombine.low %v3450_v63, %v3496_v40 }
 0x264   :  { %1361 = vmatpush1.msra.mxu0 %v4407_v26  ;;  %2673 = vmatpush3.msra.mxu1 %v4408_v28 }
 0x265   :  { %1362 = vmatprep.subr.mxu0 %v4409_v29  ;;  %2674 = vmatprep.subr.mxu1 %v4396_v6 }
 0x266   :  { %1363 = vmatpush1.msra.mxu0 %v4410_v5  ;;  %2675 = vmatpush3.msra.mxu1 %v4411_v19 }
 0x267   :  { %1364 = vmatprep.subr.mxu0 %v4412_v49  ;;  %2676 = vmatprep.subr.mxu1 %v4396_v6 }
 0x268   :  { %1365 = vmatpush1.msra.mxu0 %v4413_v25  ;;  %2677 = vmatpush3.msra.mxu1 %v4414_v37 }
 0x269   :  { %1366 = vmatprep.subr.mxu0 %v4415_v60  ;;  %2678 = vmatprep.subr.mxu1 %v4396_v6  ;;  %v4431_v60 = vcombine.low %v3480_v31, %v3511_v35 }
 0x26a   :  { %1367 = vmatpush1.msra.mxu0 %v4416_v15  ;;  %2679 = vmatpush3.msra.mxu1 %v4417_v21 }
 0x26b   :  { %1368 = vmatprep.subr.mxu0 %v4418_v61  ;;  %2680 = vmatprep.subr.mxu1 %v4396_v6 }
 0x26c   :  { %1369 = vmatpush1.msra.mxu0 %v4419_v38  ;;  %2681 = vmatpush3.msra.mxu1 %v4420_v13 }
 0x26d   :  { %1370 = vmatprep.subr.mxu0 %v4421_v11  ;;  %2682 = vmatprep.subr.mxu1 %v4396_v6 }
 0x26e   :  { %1371 = vmatpush1.msra.mxu0 %v4422_v12  ;;  %1404 = vmatprep.mubr.f32.mxu0 %v4396_v6 }
 0x26f   :  { %2683 = vmatpush3.msra.mxu1 %v4423_v16  ;;  %2684 = vmatprep.mubr.msk.f32.mxu1 %vm3060_vm1, %v4396_v6  ;;  %v3808_v16 = vld [vmem:[#allocation6 + $0x178] sm:$0xff] }
 0x270   :  { %1508 = vmatprep.subr.mxu0 %v3788_v59  ;;  %2687 = vmatprep.subr.mxu1 %v4396_v6 }
 0x30f   :  { %v1238_v27 = vpop.f32.mrf.mxu0  ;;  %v1309_v45 = vpop.f32.mrf.mxu1 }
 0x310   :  { %v1313_v18 = vadd.f32 %v1238_v27, %v4429_v14  ;;  %v1327_v49 = vadd.f32 %v3598_v0, %v1309_v45  ;;  %v3859_v27 = vld [vmem:[#allocation6 + $0x98] sm:$0xff]  ;;  %v3863_v45 = vld [vmem:[#allocation6 + $0x90] sm:$0xff]  ;;  %v3866_v14 = vld [vmem:[#allocation6 + $0xa0] sm:$0xff] }
 0x311   :  { %v2651_v20 = vpop.f32.mrf.mxu1  ;;  %v1240_v23 = vpop.f32.mrf.mxu0 }
 0x312   :  { %v2367_v22 = vmul.f32 -1.442695, %v1313_v18  ;;  %v1320_v26 = vadd.f32 %v1240_v23, %v4430_v24  ;;  %v3869_v18 = vld [vmem:[#allocation6 + $0x80] sm:$0xff]  ;;  %v3873_v20 = vld [vmem:[#allocation6 + $0x78] sm:$0xff]  ;;  %v3879_v23 = vld [vmem:[#allocation6 + $0x68] sm:$0xff] }
 0x313   :  { %v3883_v24 = vld [vmem:[#allocation6 + $0x60] sm:$0xff] }
 0x314   :  { %2857 = vpow2.f32 %v2367_v22  ;;  %v2368_v28 = vmul.f32 -1.442695, %v1320_v26  ;;  %v3876_v22 = vld [vmem:[#allocation6 + $0x88] sm:$0xff]  ;;  %v3886_v26 = vld [vmem:[#allocation6 + $0x70] sm:$0xff] }
 0x316   :  { %2859 = vpow2.f32 %v2368_v28  ;;  %v3889_v28 = vld [vmem:[#allocation6 + $0x50] sm:$0xff] }
 0x321   :  { %v2858_v29 = vpop.eup %2857 }
 0x322   :  { %v1317_v5 = vadd.f32 1.0, %v2858_v29  ;;  %v3893_v29 = vld [vmem:[#allocation6 + $0x48] sm:$0xff] }
 0x323   :  { %v2860_v19 = vpop.eup %2859 }
 0x324   :  { %2861 = vrcp.f32 %v1317_v5  ;;  %v1324_v21 = vadd.f32 1.0, %v2860_v19  ;;  %v3896_v5 = vld [vmem:[#allocation6 + $0x58] sm:$0xff] }
 0x325   :  { %v3899_v19 = vld [vmem:[#allocation6 + $0x38] sm:$0xff] }
 0x331   :  { %v2862_v25 = vpop.eup %2861 }
 0x332   :  { %v1328_v37 = vmul.f32 %v2862_v25, %v1327_v49  ;;  %v3903_v49 = vld [vmem:[#allocation6 + $0x30] sm:$0xff]  ;;  %v3906_v25 = vld [vmem:[#allocation6 + $0x40] sm:$0xff] }
 0x333   :  { %4433 = vst [vmem:[#allocation26_spill] sm:$0xff] %v3903_v49  ;;  %4434 = vst [vmem:[#allocation27_spill] sm:$0xff] %v3906_v25 }
 0x334   :  { %v1329_v15 = vadd.f32 %v1328_v37, %v4431_v60  ;;  %v3909_v37 = vld [vmem:[#allocation6 + $0x20] sm:$0xff]  ;;  %v3913_v60 = vld [vmem:[#allocation6 + $0x18] sm:$0xff] }
 0x335   :  { %4435 = vst [vmem:[#allocation43_spill] sm:$0xff] %v3909_v37  ;;  %4436 = vst [vmem:[#allocation28_spill] sm:$0xff] %v3913_v60 }
 0x336   :  { %2863 = vtanh.f32 %v1329_v15  ;;  %v3916_v15 = vld [vmem:[#allocation6 + $0x28] sm:$0xff] }
 0x337   :  { %2865 = vrcp.f32 %v1324_v21  ;;  %4437 = vst [vmem:[#allocation29_spill] sm:$0xff] %v3916_v15  ;;  %v3919_v21 = vld [vmem:[#allocation6 + $0x8] sm:$0xff] }
 0x338   :  { %4438 = vst [vmem:[#allocation44_spill] sm:$0xff] %v3919_v21 }
 0x33a   :  { %v4445_v31 = vld [vmem:[#allocation26_spill] sm:$0xff]  ;;  %v4446_v35 = vld [vmem:[#allocation27_spill] sm:$0xff] }
 0x343   :  { %v2864_v61 = vpop.eup %2863 }
 0x344   :  { %v1331_v38 = vsub.f32 %v3685_v30, %v2864_v61  ;;  %v2866_v13 = vpop.eup %2865 }
 0x346   :  { %v1332_v11 = vmul.f32 %v2866_v13, %v1331_v38  ;;  %v3927_v38 = vld [vmem:[#allocation6 + $0x10] sm:$0xff] }
 0x347   :  { %4440 = vst [vmem:[#allocation31_spill] sm:$0xff] %v3927_v38 }
 0x348   :  { %v3803_v12 = vadd.f32 %v2864_v61, %v1332_v11  ;;  %v3923_v61 = vld [vmem:[#allocation6] sm:$0xff] }
 0x349   :  { %4439 = vst [vmem:[#allocation30_spill] sm:$0xff] %v3923_v61 }
 0x34a   :  { %4432 = vst [vmem:[#allocation42_spill] sm:$0xff] %v3803_v12  ;;  %1405 = vmatmul.mubr.f32.vlgmr.msra.gmra.mxu0 %v3803_v12  ;;  %2685 = vmatmul.mubr.f32.vlgmr.msra.gmra.mxu1 %v3803_v12 }
 0x34b   :  { %1509 = vmatpush1.msra.mxu0 %v3689_v44  ;;  %2688 = vmatpush3.msra.mxu1 %v3808_v16 }
 0x34c   :  { %1510 = vmatprep.subr.mxu0 %v3693_v50  ;;  %2689 = vmatprep.subr.mxu1 %v4396_v6 }
 0x34d   :  { %1511 = vmatpush1.msra.mxu0 %v3697_v3  ;;  %2690 = vmatpush3.msra.mxu1 %v3814_v17 }
 0x34e   :  { %1512 = vmatprep.subr.mxu0 %v3701_v51  ;;  %2691 = vmatprep.subr.mxu1 %v4396_v6 }
 0x34f   :  { %1513 = vmatpush1.msra.mxu0 %v3705_v10  ;;  %2692 = vmatpush3.msra.mxu1 %v3820_v62 }
 0x350   :  { %1514 = vmatprep.subr.mxu0 %v3709_v53  ;;  %2693 = vmatprep.subr.mxu1 %v4396_v6 }
 0x351   :  { %1515 = vmatpush1.msra.mxu0 %v3713_v8  ;;  %2694 = vmatpush3.msra.mxu1 %v3826_v43 }
 0x352   :  { %1516 = vmatprep.subr.mxu0 %v3717_v54  ;;  %2695 = vmatprep.subr.mxu1 %v4396_v6 }
 0x353   :  { %1517 = vmatpush1.msra.mxu0 %v3721_v41  ;;  %2696 = vmatpush3.msra.mxu1 %v3832_v2 }
 0x354   :  { %1518 = vmatprep.subr.mxu0 %v3725_v55  ;;  %2697 = vmatprep.subr.mxu1 %v4396_v6 }
 0x355   :  { %1519 = vmatpush1.msra.mxu0 %v3729_v47  ;;  %2698 = vmatpush3.msra.mxu1 %v3838_v42 }
 0x356   :  { %1520 = vmatprep.subr.mxu0 %v3733_v56  ;;  %2699 = vmatprep.subr.mxu1 %v4396_v6 }
 0x357   :  { %1521 = vmatpush1.msra.mxu0 %v3737_v9  ;;  %2700 = vmatpush3.msra.mxu1 %v3844_v1 }
 0x358   :  { %1522 = vmatprep.subr.mxu0 %v3741_v57  ;;  %2701 = vmatprep.subr.mxu1 %v4396_v6 }
 0x359   :  { %1523 = vmatpush1.msra.mxu0 %v3745_v33  ;;  %2702 = vmatpush3.msra.mxu1 %v3850_v32 }
 0x35a   :  { %1524 = vmatprep.subr.mxu0 %v3749_v58  ;;  %2703 = vmatprep.subr.mxu1 %v4396_v6 }
 0x35b   :  { %1525 = vmatpush1.msra.mxu0 %v3753_v36  ;;  %2704 = vmatpush3.msra.mxu1 %v3856_v7 }
 0x35c   :  { %1526 = vmatprep.subr.mxu0 %v3859_v27  ;;  %2705 = vmatprep.subr.mxu1 %v4396_v6 }
 0x35d   :  { %1527 = vmatpush1.msra.mxu0 %v3863_v45  ;;  %2706 = vmatpush3.msra.mxu1 %v3866_v14 }
 0x35e   :  { %1528 = vmatprep.subr.mxu0 %v3869_v18  ;;  %2707 = vmatprep.subr.mxu1 %v4396_v6 }
 0x35f   :  { %1529 = vmatpush1.msra.mxu0 %v3873_v20  ;;  %2708 = vmatpush3.msra.mxu1 %v3876_v22 }
 0x360   :  { %1530 = vmatprep.subr.mxu0 %v3879_v23  ;;  %2709 = vmatprep.subr.mxu1 %v4396_v6 }
 0x361   :  { %1531 = vmatpush1.msra.mxu0 %v3883_v24  ;;  %2710 = vmatpush3.msra.mxu1 %v3886_v26 }
 0x362   :  { %1532 = vmatprep.subr.mxu0 %v3889_v28  ;;  %2711 = vmatprep.subr.mxu1 %v4396_v6 }
 0x363   :  { %1533 = vmatpush1.msra.mxu0 %v3893_v29  ;;  %2712 = vmatpush3.msra.mxu1 %v3896_v5 }
 0x364   :  { %1534 = vmatprep.subr.mxu0 %v3899_v19  ;;  %2713 = vmatprep.subr.mxu1 %v4396_v6 }
 0x365   :  { %1535 = vmatpush1.msra.mxu0 %v3903_v49  ;;  %2714 = vmatpush3.msra.mxu1 %v3906_v25 }
 0x366   :  { %1536 = vmatprep.subr.mxu0 %v3909_v37  ;;  %2715 = vmatprep.subr.mxu1 %v4396_v6 }
 0x367   :  { %1537 = vmatpush1.msra.mxu0 %v3913_v60  ;;  %2716 = vmatpush3.msra.mxu1 %v3916_v15 }
 0x368   :  { %1538 = vmatprep.subr.mxu0 %v3919_v21  ;;  %2717 = vmatprep.subr.mxu1 %v4396_v6 }
 0x369   :  { %1539 = vmatpush1.msra.mxu0 %v3923_v61  ;;  %1572 = vmatprep.mubr.f32.mxu0 %v4396_v6 }
 0x36a   :  { %2718 = vmatpush3.msra.mxu1 %v3927_v38  ;;  %2719 = vmatprep.mubr.msk.f32.mxu1 %vm3060_vm1, %v4396_v6  ;;  %v4442_v38 = vcombine.high %v3450_v63, %v3496_v40 }
 0x36b   :  { %1676 = vmatprep.subr.mxu0 %v3788_v59  ;;  %2722 = vmatprep.subr.mxu1 %v4396_v6 }
 0x40a   :  { %v1406_v13 = vpop.f32.mrf.mxu0  ;;  %v1477_v11 = vpop.f32.mrf.mxu1 }
 0x40b   :  { %v1481_v30 = vadd.f32 %v1406_v13, %v4441_v34  ;;  %v1495_v37 = vadd.f32 %v3598_v0, %v1477_v11  ;;  %v4455_v13 = vld [vmem:[#allocation58_spill] sm:$0xff] }
 0x40c   :  { %v2686_v39 = vpop.f32.mrf.mxu1  ;;  %v1408_v48 = vpop.f32.mrf.mxu0 }
 0x40d   :  { %v2369_v4 = vmul.f32 -1.442695, %v1481_v30  ;;  %v1488_v61 = vadd.f32 %v1408_v48, %v4442_v38  ;;  %v4447_v30 = vld [vmem:[#allocation43_spill] sm:$0xff]  ;;  %v4454_v38 = vld [vmem:[#allocation53_spill] sm:$0xff] }
 0x40e   :  { %v4456_v11 = vcombine.low %v4454_v38, %v4455_v13  ;;  %v4460_v13 = vld [vmem:[#allocation55_spill] sm:$0xff] }
 0x40f   :  { %2867 = vpow2.f32 %v2369_v4  ;;  %v2370_v21 = vmul.f32 -1.442695, %v1488_v61 }
 0x411   :  { %2869 = vpow2.f32 %v2370_v21 }
 0x41c   :  { %v2868_v15 = vpop.eup %2867 }
 0x41d   :  { %v1485_v60 = vadd.f32 1.0, %v2868_v15  ;;  %v4453_v15 = vld [vmem:[#allocation25_spill] sm:$0xff] }
 0x41e   :  { %v2870_v59 = vpop.eup %2869 }
 0x41f   :  { %2871 = vrcp.f32 %v1485_v60  ;;  %v1492_v46 = vadd.f32 1.0, %v2870_v59  ;;  %v4448_v59 = vld [vmem:[#allocation28_spill] sm:$0xff]  ;;  %v4452_v60 = vld [vmem:[#allocation31_spill] sm:$0xff] }
 0x42c   :  { %v2872_v25 = vpop.eup %2871 }
 0x42d   :  { %v1496_v49 = vmul.f32 %v2872_v25, %v1495_v37  ;;  %v4450_v25 = vld [vmem:[#allocation44_spill] sm:$0xff]  ;;  %v4451_v37 = vld [vmem:[#allocation30_spill] sm:$0xff] }
 0x42f   :  { %v1497_v39 = vadd.f32 %v1496_v49, %v4443_v52  ;;  %v4449_v49 = vld [vmem:[#allocation29_spill] sm:$0xff] }
 0x431   :  { %2873 = vtanh.f32 %v1497_v39 }
 0x432   :  { %2875 = vrcp.f32 %v1492_v46 }
 0x43e   :  { %v2874_v34 = vpop.eup %2873 }
 0x43f   :  { %v1499_v48 = vsub.f32 %v3803_v12, %v2874_v34  ;;  %v2876_v63 = vpop.eup %2875 }
 0x441   :  { %v1500_v40 = vmul.f32 %v2876_v63, %v1499_v48  ;;  %v4457_v48 = vld [vmem:[#allocation54_spill] sm:$0xff]  ;;  %v4458_v63 = vld [vmem:[#allocation61_spill] sm:$0xff] }
 0x443   :  { %v3945_v4 = vadd.f32 %v2874_v34, %v1500_v40  ;;  %v4459_v40 = vcombine.low %v4457_v48, %v4458_v63 }
 0x445   :  { %4444 = vst [vmem:[#allocation45_spill] sm:$0xff] %v3945_v4  ;;  %1573 = vmatmul.mubr.f32.vlgmr.msra.gmra.mxu0 %v3945_v4  ;;  %2720 = vmatmul.mubr.f32.vlgmr.msra.gmra.mxu1 %v3945_v4 }
 0x446   :  { %1677 = vmatpush1.msra.mxu0 %v3689_v44  ;;  %2723 = vmatpush3.msra.mxu1 %v3808_v16 }
 0x447   :  { %1678 = vmatprep.subr.mxu0 %v3693_v50  ;;  %2724 = vmatprep.subr.mxu1 %v4396_v6 }
 0x448   :  { %1679 = vmatpush1.msra.mxu0 %v3697_v3  ;;  %2725 = vmatpush3.msra.mxu1 %v3814_v17 }
 0x449   :  { %1680 = vmatprep.subr.mxu0 %v3701_v51  ;;  %2726 = vmatprep.subr.mxu1 %v4396_v6 }
 0x44a   :  { %1681 = vmatpush1.msra.mxu0 %v3705_v10  ;;  %2727 = vmatpush3.msra.mxu1 %v3820_v62 }
 0x44b   :  { %1682 = vmatprep.subr.mxu0 %v3709_v53  ;;  %2728 = vmatprep.subr.mxu1 %v4396_v6 }
 0x44c   :  { %1683 = vmatpush1.msra.mxu0 %v3713_v8  ;;  %2729 = vmatpush3.msra.mxu1 %v3826_v43 }
 0x44d   :  { %1684 = vmatprep.subr.mxu0 %v3717_v54  ;;  %2730 = vmatprep.subr.mxu1 %v4396_v6 }
 0x44e   :  { %1685 = vmatpush1.msra.mxu0 %v3721_v41  ;;  %2731 = vmatpush3.msra.mxu1 %v3832_v2 }
 0x44f   :  { %1686 = vmatprep.subr.mxu0 %v3725_v55  ;;  %2732 = vmatprep.subr.mxu1 %v4396_v6 }
 0x450   :  { %1687 = vmatpush1.msra.mxu0 %v3729_v47  ;;  %2733 = vmatpush3.msra.mxu1 %v3838_v42 }
 0x451   :  { %1688 = vmatprep.subr.mxu0 %v3733_v56  ;;  %2734 = vmatprep.subr.mxu1 %v4396_v6 }
 0x452   :  { %1689 = vmatpush1.msra.mxu0 %v3737_v9  ;;  %2735 = vmatpush3.msra.mxu1 %v3844_v1 }
 0x453   :  { %1690 = vmatprep.subr.mxu0 %v3741_v57  ;;  %2736 = vmatprep.subr.mxu1 %v4396_v6 }
 0x454   :  { %1691 = vmatpush1.msra.mxu0 %v3745_v33  ;;  %2737 = vmatpush3.msra.mxu1 %v3850_v32 }
 0x455   :  { %1692 = vmatprep.subr.mxu0 %v3749_v58  ;;  %2738 = vmatprep.subr.mxu1 %v4396_v6 }
 0x456   :  { %1693 = vmatpush1.msra.mxu0 %v3753_v36  ;;  %2739 = vmatpush3.msra.mxu1 %v3856_v7 }
 0x457   :  { %1694 = vmatprep.subr.mxu0 %v3859_v27  ;;  %2740 = vmatprep.subr.mxu1 %v4396_v6 }
 0x458   :  { %1695 = vmatpush1.msra.mxu0 %v3863_v45  ;;  %2741 = vmatpush3.msra.mxu1 %v3866_v14 }
 0x459   :  { %1696 = vmatprep.subr.mxu0 %v3869_v18  ;;  %2742 = vmatprep.subr.mxu1 %v4396_v6 }
 0x45a   :  { %1697 = vmatpush1.msra.mxu0 %v3873_v20  ;;  %2743 = vmatpush3.msra.mxu1 %v3876_v22 }
 0x45b   :  { %1698 = vmatprep.subr.mxu0 %v3879_v23  ;;  %2744 = vmatprep.subr.mxu1 %v4396_v6 }
 0x45c   :  { %1699 = vmatpush1.msra.mxu0 %v3883_v24  ;;  %2745 = vmatpush3.msra.mxu1 %v3886_v26 }
 0x45d   :  { %1700 = vmatprep.subr.mxu0 %v3889_v28  ;;  %2746 = vmatprep.subr.mxu1 %v4396_v6 }
 0x45e   :  { %1701 = vmatpush1.msra.mxu0 %v3893_v29  ;;  %2747 = vmatpush3.msra.mxu1 %v3896_v5 }
 0x45f   :  { %1702 = vmatprep.subr.mxu0 %v3899_v19  ;;  %2748 = vmatprep.subr.mxu1 %v4396_v6 }
 0x460   :  { %1703 = vmatpush1.msra.mxu0 %v4445_v31  ;;  %2749 = vmatpush3.msra.mxu1 %v4446_v35 }
 0x461   :  { %1704 = vmatprep.subr.mxu0 %v4447_v30  ;;  %2750 = vmatprep.subr.mxu1 %v4396_v6 }
 0x462   :  { %1705 = vmatpush1.msra.mxu0 %v4448_v59  ;;  %2751 = vmatpush3.msra.mxu1 %v4449_v49 }
 0x463   :  { %1706 = vmatprep.subr.mxu0 %v4450_v25  ;;  %2752 = vmatprep.subr.mxu1 %v4396_v6 }
 0x464   :  { %1707 = vmatpush1.msra.mxu0 %v4451_v37  ;;  %1740 = vmatprep.mubr.f32.mxu0 %v4396_v6 }
 0x465   :  { %2753 = vmatpush3.msra.mxu1 %v4452_v60  ;;  %2754 = vmatprep.mubr.msk.f32.mxu1 %vm3060_vm1, %v4396_v6 }
 0x466   :  { %1844 = vmatprep.subr.mxu0 %v4453_v15  ;;  %2757 = vmatprep.subr.mxu1 %v4396_v6 }
 0x505   :  { %v1574_v21 = vpop.f32.mrf.mxu0  ;;  %v1645_v61 = vpop.f32.mrf.mxu1 }
 0x506   :  { %v1649_v52 = vadd.f32 %v1574_v21, %v4456_v11  ;;  %v1663_v49 = vadd.f32 %v3598_v0, %v1645_v61  ;;  %v4461_v21 = vld [vmem:[#allocation57_spill] sm:$0xff] }
 0x507   :  { %v2721_v39 = vpop.f32.mrf.mxu1  ;;  %v1576_v34 = vpop.f32.mrf.mxu0  ;;  %v4462_v11 = vcombine.low %v4460_v13, %v4461_v21  ;;  %v4469_v61 = vld [vmem:[#allocation25_spill] sm:$0xff] }
 0x508   :  { %v2371_v46 = vmul.f32 -1.442695, %v1649_v52  ;;  %v1656_v12 = vadd.f32 %v1576_v34, %v4459_v40 }
 0x50a   :  { %2877 = vpow2.f32 %v2371_v46  ;;  %v2372_v60 = vmul.f32 -1.442695, %v1656_v12 }
 0x50c   :  { %2879 = vpow2.f32 %v2372_v60  ;;  %v4467_v60 = vld [vmem:[#allocation30_spill] sm:$0xff] }
 0x517   :  { %v2878_v37 = vpop.eup %2877 }
 0x518   :  { %v1653_v25 = vadd.f32 1.0, %v2878_v37 }
 0x519   :  { %v2880_v15 = vpop.eup %2879 }
 0x51a   :  { %2881 = vrcp.f32 %v1653_v25  ;;  %v1660_v39 = vadd.f32 1.0, %v2880_v15  ;;  %v4466_v25 = vld [vmem:[#allocation44_spill] sm:$0xff]  ;;  %v4468_v15 = vld [vmem:[#allocation31_spill] sm:$0xff] }
 0x527   :  { %v2882_v59 = vpop.eup %2881 }
 0x528   :  { %v1664_v30 = vmul.f32 %v2882_v59, %v1663_v49  ;;  %v4464_v59 = vld [vmem:[#allocation28_spill] sm:$0xff]  ;;  %v4465_v49 = vld [vmem:[#allocation29_spill] sm:$0xff] }
 0x52a   :  { %v1665_v52 = vadd.f32 %v1664_v30, %v4462_v11  ;;  %v4463_v30 = vld [vmem:[#allocation43_spill] sm:$0xff] }
 0x52c   :  { %2883 = vtanh.f32 %v1665_v52 }
 0x52d   :  { %2885 = vrcp.f32 %v1660_v39  ;;  %v4470_v39 = vld [vmem:[#allocation58_spill] sm:$0xff] }
 0x539   :  { %v2884_v46 = vpop.eup %2883 }
 0x53a   :  { %v1667_v34 = vsub.f32 %v3945_v4, %v2884_v46  ;;  %v2886_v12 = vpop.eup %2885 }
 0x53c   :  { %v1668_v40 = vmul.f32 %v2886_v12, %v1667_v34 }
 0x53e   :  { %v4027_v37 = vadd.f32 %v2884_v46, %v1668_v40  ;;  %v4471_v46 = vcombine.high %v4454_v38, %v4470_v39  ;;  %v4473_v38 = vcombine.high %v4460_v13, %v4461_v21 }
 0x540   :  { %1741 = vmatmul.mubr.f32.vlgmr.msra.gmra.mxu0 %v4027_v37  ;;  %2755 = vmatmul.mubr.f32.vlgmr.msra.gmra.mxu1 %v4027_v37 }
 0x541   :  { %1845 = vmatpush1.msra.mxu0 %v3689_v44  ;;  %2758 = vmatpush3.msra.mxu1 %v3808_v16 }
 0x542   :  { %1846 = vmatprep.subr.mxu0 %v3693_v50  ;;  %2759 = vmatprep.subr.mxu1 %v4396_v6 }
 0x543   :  { %1847 = vmatpush1.msra.mxu0 %v3697_v3  ;;  %2760 = vmatpush3.msra.mxu1 %v3814_v17 }
 0x544   :  { %1848 = vmatprep.subr.mxu0 %v3701_v51  ;;  %2761 = vmatprep.subr.mxu1 %v4396_v6 }
 0x545   :  { %1849 = vmatpush1.msra.mxu0 %v3705_v10  ;;  %2762 = vmatpush3.msra.mxu1 %v3820_v62 }
 0x546   :  { %1850 = vmatprep.subr.mxu0 %v3709_v53  ;;  %2763 = vmatprep.subr.mxu1 %v4396_v6 }
 0x547   :  { %1851 = vmatpush1.msra.mxu0 %v3713_v8  ;;  %2764 = vmatpush3.msra.mxu1 %v3826_v43 }
 0x548   :  { %1852 = vmatprep.subr.mxu0 %v3717_v54  ;;  %2765 = vmatprep.subr.mxu1 %v4396_v6 }
 0x549   :  { %1853 = vmatpush1.msra.mxu0 %v3721_v41  ;;  %2766 = vmatpush3.msra.mxu1 %v3832_v2 }
 0x54a   :  { %1854 = vmatprep.subr.mxu0 %v3725_v55  ;;  %2767 = vmatprep.subr.mxu1 %v4396_v6 }
 0x54b   :  { %1855 = vmatpush1.msra.mxu0 %v3729_v47  ;;  %2768 = vmatpush3.msra.mxu1 %v3838_v42 }
 0x54c   :  { %1856 = vmatprep.subr.mxu0 %v3733_v56  ;;  %2769 = vmatprep.subr.mxu1 %v4396_v6 }
 0x54d   :  { %1857 = vmatpush1.msra.mxu0 %v3737_v9  ;;  %2770 = vmatpush3.msra.mxu1 %v3844_v1 }
 0x54e   :  { %1858 = vmatprep.subr.mxu0 %v3741_v57  ;;  %2771 = vmatprep.subr.mxu1 %v4396_v6 }
 0x54f   :  { %1859 = vmatpush1.msra.mxu0 %v3745_v33  ;;  %2772 = vmatpush3.msra.mxu1 %v3850_v32 }
 0x550   :  { %1860 = vmatprep.subr.mxu0 %v3749_v58  ;;  %2773 = vmatprep.subr.mxu1 %v4396_v6 }
 0x551   :  { %1861 = vmatpush1.msra.mxu0 %v3753_v36  ;;  %2774 = vmatpush3.msra.mxu1 %v3856_v7 }
 0x552   :  { %1862 = vmatprep.subr.mxu0 %v3859_v27  ;;  %2775 = vmatprep.subr.mxu1 %v4396_v6 }
 0x553   :  { %1863 = vmatpush1.msra.mxu0 %v3863_v45  ;;  %2776 = vmatpush3.msra.mxu1 %v3866_v14 }
 0x554   :  { %1864 = vmatprep.subr.mxu0 %v3869_v18  ;;  %2777 = vmatprep.subr.mxu1 %v4396_v6 }
 0x555   :  { %1865 = vmatpush1.msra.mxu0 %v3873_v20  ;;  %2778 = vmatpush3.msra.mxu1 %v3876_v22 }
 0x556   :  { %1866 = vmatprep.subr.mxu0 %v3879_v23  ;;  %2779 = vmatprep.subr.mxu1 %v4396_v6 }
 0x557   :  { %1867 = vmatpush1.msra.mxu0 %v3883_v24  ;;  %2780 = vmatpush3.msra.mxu1 %v3886_v26 }
 0x558   :  { %1868 = vmatprep.subr.mxu0 %v3889_v28  ;;  %2781 = vmatprep.subr.mxu1 %v4396_v6 }
 0x559   :  { %1869 = vmatpush1.msra.mxu0 %v3893_v29  ;;  %2782 = vmatpush3.msra.mxu1 %v3896_v5 }
 0x55a   :  { %1870 = vmatprep.subr.mxu0 %v3899_v19  ;;  %2783 = vmatprep.subr.mxu1 %v4396_v6 }
 0x55b   :  { %1871 = vmatpush1.msra.mxu0 %v4445_v31  ;;  %2784 = vmatpush3.msra.mxu1 %v4446_v35 }
 0x55c   :  { %1872 = vmatprep.subr.mxu0 %v4463_v30  ;;  %2785 = vmatprep.subr.mxu1 %v4396_v6 }
 0x55d   :  { %1873 = vmatpush1.msra.mxu0 %v4464_v59  ;;  %2786 = vmatpush3.msra.mxu1 %v4465_v49 }
 0x55e   :  { %1874 = vmatprep.subr.mxu0 %v4466_v25  ;;  %2787 = vmatprep.subr.mxu1 %v4396_v6 }
 0x55f   :  { %1875 = vmatpush1.msra.mxu0 %v4467_v60  ;;  %1908 = vmatprep.mubr.f32.mxu0 %v4396_v6 }
 0x560   :  { %2788 = vmatpush3.msra.mxu1 %v4468_v15  ;;  %2789 = vmatprep.mubr.msk.f32.mxu1 %vm3060_vm1, %v4396_v6  ;;  %v4472_v15 = vcombine.high %v4457_v48, %v4458_v63 }
 0x561   :  { %2012 = vmatprep.subr.mxu0 %v4469_v61  ;;  %2792 = vmatprep.subr.mxu1 %v4396_v6 }
 0x600   :  { %v1742_v11 = vpop.f32.mrf.mxu0  ;;  %v1813_v52 = vpop.f32.mrf.mxu1 }
 0x601   :  { %v1817_v34 = vadd.f32 %v1742_v11, %v4471_v46  ;;  %v1831_v30 = vadd.f32 %v3598_v0, %v1813_v52  ;;  %v4474_v0 = vld [vmem:[#allocation26_spill] sm:$0xff] }
 0x602   :  { %v2756_v12 = vpop.f32.mrf.mxu1  ;;  %v1744_v4 = vpop.f32.mrf.mxu0 }
 0x603   :  { %v2373_v40 = vmul.f32 -1.442695, %v1817_v34  ;;  %v1824_v60 = vadd.f32 %v1744_v4, %v4472_v15 }
 0x605   :  { %2887 = vpow2.f32 %v2373_v40  ;;  %v2374_v25 = vmul.f32 -1.442695, %v1824_v60 }
 0x607   :  { %2889 = vpow2.f32 %v2374_v25 }
 0x612   :  { %v2888_v49 = vpop.eup %2887 }
 0x613   :  { %v1821_v59 = vadd.f32 1.0, %v2888_v49 }
 0x614   :  { %v2890_v61 = vpop.eup %2889 }
 0x615   :  { %2891 = vrcp.f32 %v1821_v59  ;;  %v1828_v39 = vadd.f32 1.0, %v2890_v61 }
 0x622   :  { %v2892_v35 = vpop.eup %2891 }
 0x623   :  { %v1832_v31 = vmul.f32 %v2892_v35, %v1831_v30 }
 0x625   :  { %v1833_v11 = vadd.f32 %v1832_v31, %v4473_v38 }
 0x627   :  { %2893 = vtanh.f32 %v1833_v11 }
 0x628   :  { %2895 = vrcp.f32 %v1828_v39 }
 0x634   :  { %v2894_v46 = vpop.eup %2893 }
 0x635   :  { %v1835_v4 = vsub.f32 %v4027_v37, %v2894_v46  ;;  %v2896_v48 = vpop.eup %2895 }
 0x637   :  { %v1836_v63 = vmul.f32 %v2896_v48, %v1835_v4  ;;  %v4494_v4 = vld [vmem:[#allocation45_spill] sm:$0xff]  ;;  %v4495_v48 = vld [vmem:[#allocation24_spill] sm:$0xff] }
 0x639   :  { %v4109_v49 = vadd.f32 %v2894_v46, %v1836_v63  ;;  %v2201_v63 = vcombine.low %v4495_v48, %v4494_v4 }
 0x63b   :  { %1909 = vmatmul.mubr.f32.vlgmr.msra.gmra.mxu0 %v4109_v49  ;;  %2790 = vmatmul.mubr.f32.vlgmr.msra.gmra.mxu1 %v4109_v49 }
 0x63c   :  { %2013 = vmatpush1.msra.mxu0 %v3689_v44  ;;  %2793 = vmatpush3.msra.mxu1 %v3808_v16  ;;  %v4475_v44 = vld [vmem:[#allocation27_spill] sm:$0xff]  ;;  %v4486_v16 = vld [vmem:[#allocation64_spill] sm:$0xff] }
 0x63d   :  { %2014 = vmatprep.subr.mxu0 %v3693_v50  ;;  %2794 = vmatprep.subr.mxu1 %v4396_v6  ;;  %v4476_v50 = vld [vmem:[#allocation43_spill] sm:$0xff] }
 0x63e   :  { %2015 = vmatpush1.msra.mxu0 %v3697_v3  ;;  %2795 = vmatpush3.msra.mxu1 %v3814_v17  ;;  %v4477_v3 = vld [vmem:[#allocation28_spill] sm:$0xff] }
 0x63f   :  { %2016 = vmatprep.subr.mxu0 %v3701_v51  ;;  %2796 = vmatprep.subr.mxu1 %v4396_v6  ;;  %v4478_v51 = vld [vmem:[#allocation29_spill] sm:$0xff] }
 0x640   :  { %2017 = vmatpush1.msra.mxu0 %v3705_v10  ;;  %2797 = vmatpush3.msra.mxu1 %v3820_v62  ;;  %v4479_v10 = vld [vmem:[#allocation44_spill] sm:$0xff] }
 0x641   :  { %2018 = vmatprep.subr.mxu0 %v3709_v53  ;;  %2798 = vmatprep.subr.mxu1 %v4396_v6  ;;  %v4480_v53 = vld [vmem:[#allocation30_spill] sm:$0xff] }
 0x642   :  { %2019 = vmatpush1.msra.mxu0 %v3713_v8  ;;  %2799 = vmatpush3.msra.mxu1 %v3826_v43  ;;  %v4481_v8 = vld [vmem:[#allocation31_spill] sm:$0xff] }
 0x643   :  { %2020 = vmatprep.subr.mxu0 %v3717_v54  ;;  %2800 = vmatprep.subr.mxu1 %v4396_v6 }
 0x644   :  { %2021 = vmatpush1.msra.mxu0 %v3721_v41  ;;  %2801 = vmatpush3.msra.mxu1 %v3832_v2 }
 0x645   :  { %2022 = vmatprep.subr.mxu0 %v3725_v55  ;;  %2802 = vmatprep.subr.mxu1 %v4396_v6  ;;  %v4482_v55 = vld [vmem:[#allocation56_spill] sm:$0xff] }
 0x646   :  { %2023 = vmatpush1.msra.mxu0 %v3729_v47  ;;  %2803 = vmatpush3.msra.mxu1 %v3838_v42  ;;  %v4483_v47 = vld [vmem:[#allocation62_spill] sm:$0xff] }
 0x647   :  { %2024 = vmatprep.subr.mxu0 %v3733_v56  ;;  %2804 = vmatprep.subr.mxu1 %v4396_v6  ;;  %v4484_v56 = vcombine.low %v4482_v55, %v4483_v47  ;;  %v4491_v31 = vcombine.high %v4482_v55, %v4483_v47 }
 0x648   :  { %2025 = vmatpush1.msra.mxu0 %v3737_v9  ;;  %2805 = vmatpush3.msra.mxu1 %v3844_v1  ;;  %v2965_v1 = vld [vmem:[%s4238_s4] ss:$0 sm:$0xff]  ;;  %s3063_s4 = smov [#allocation10]  }
 0x649   :  { %2026 = vmatprep.subr.mxu0 %v3741_v57  ;;  %2806 = vmatprep.subr.mxu1 %v4396_v6  ;;  %s2334_s12 = sshll.u32 %s3063_s4, 4  ;;  %s2335_s12 = int_to_ptr.vmem [resolvable:$true] %s2334_s12 }
 0x64a   :  { %2027 = vmatpush1.msra.mxu0 %v3745_v33  ;;  %2807 = vmatpush3.msra.mxu1 %v3850_v32  ;;  %s3026_s13 = scalar_lea.vmem %s2335_s12, 1024  ;;  %p3031_p2 = scmp.lt.s32.totalorder %s2335_s12, %s2335_s12 }
 0x64b   :  { %2028 = vmatprep.subr.mxu0 %v3749_v58  ;;  %2808 = vmatprep.subr.mxu1 %v4396_v6  ;;  %p3027_p1 = scmp.ne.s32.totalorder %s2335_s12, %s3026_s13  ;;  %p3032_p3 = scmp.lt.s32.totalorder %s3026_s13, %s3026_s13 }
 0x64c   :  { %2029 = vmatpush1.msra.mxu0 %v3753_v36  ;;  %2809 = vmatpush3.msra.mxu1 %v3856_v7  ;;  %v4485_v36 = vld [vmem:[#allocation63_spill] sm:$0xff] }
 0x64d   :  { %2030 = vmatprep.subr.mxu0 %v3859_v27  ;;  %2810 = vmatprep.subr.mxu1 %v4396_v6  ;;  %v4487_v17 = vcombine.low %v4485_v36, %v4486_v16  ;;  %v4492_v59 = vcombine.high %v4485_v36, %v4486_v16  ;;  %p3033_p4 = por %p3032_p3, %p3031_p2 }
 0x64e   :  { %2031 = vmatpush1.msra.mxu0 %v3863_v45  ;;  %2811 = vmatpush3.msra.mxu1 %v3866_v14  ;;  %v4488_v45 = vld [vmem:[#allocation59_spill] sm:$0xff]  ;;  %v4489_v14 = vld [vmem:[#allocation60_spill] sm:$0xff] }
 0x64f   :  { %2032 = vmatprep.subr.mxu0 %v3869_v18  ;;  %2812 = vmatprep.subr.mxu1 %v4396_v6  ;;  %v4490_v18 = vcombine.low %v4488_v45, %v4489_v14  ;;  %v4493_v38 = vcombine.high %v4488_v45, %v4489_v14  ;;  %v4499_v45 = vld [vmem:[#allocation52_spill] sm:$0xff]  ;;  %p3034_p5 = pnand %p3033_p4, %p3027_p1 }
 0x650   :  { %2033 = vmatpush1.msra.mxu0 %v3873_v20  ;;  %2813 = vmatpush3.msra.mxu1 %v3876_v22 }
 0x651   :  { %2034 = vmatprep.subr.mxu0 %v3879_v23  ;;  %2814 = vmatprep.subr.mxu1 %v4396_v6 }
 0x652   :  { %2035 = vmatpush1.msra.mxu0 %v3883_v24  ;;  %2815 = vmatpush3.msra.mxu1 %v3886_v26 }
 0x653   :  { %2036 = vmatprep.subr.mxu0 %v3889_v28  ;;  %2816 = vmatprep.subr.mxu1 %v4396_v6 }
 0x654   :  { %2037 = vmatpush1.msra.mxu0 %v3893_v29  ;;  %2817 = vmatpush3.msra.mxu1 %v3896_v5 }
 0x655   :  { %2038 = vmatprep.subr.mxu0 %v3899_v19  ;;  %2818 = vmatprep.subr.mxu1 %v4396_v6 }
 0x656   :  { %2039 = vmatpush1.msra.mxu0 %v4474_v0  ;;  %2819 = vmatpush3.msra.mxu1 %v4475_v44 }
 0x657   :  { %2040 = vmatprep.subr.mxu0 %v4476_v50  ;;  %2820 = vmatprep.subr.mxu1 %v4396_v6  ;;  %v4496_v50 = vld [vmem:[#allocation42_spill] sm:$0xff] }
 0x658   :  { %2041 = vmatpush1.msra.mxu0 %v4477_v3  ;;  %2821 = vmatpush3.msra.mxu1 %v4478_v51  ;;  %v4497_v3 = vld [vmem:[#allocation65_spill] sm:$0xff] }
 0x659   :  { %2042 = vmatprep.subr.mxu0 %v4479_v10  ;;  %2822 = vmatprep.subr.mxu1 %v4396_v6  ;;  %v2185_v51 = vcombine.low %v4497_v3, %v4496_v50  ;;  %v2202_v10 = vcombine.high %v4495_v48, %v4494_v4 }
 0x65a   :  { %2043 = vmatpush1.msra.mxu0 %v4480_v53  ;;  %2076 = vmatprep.mubr.f32.mxu0 %v4396_v6 }
 0x65b   :  { %2823 = vmatpush3.msra.mxu1 %v4481_v8  ;;  %2824 = vmatprep.mubr.msk.f32.mxu1 %vm3060_vm1, %v4396_v6  ;;  %v2186_v8 = vcombine.high %v4497_v3, %v4496_v50 }
 0x6fb   :  { %v1910_v54 = vpop.f32.mrf.mxu0  ;;  %v1981_v41 = vpop.f32.mrf.mxu1 }
 0x6fc   :  { %v1985_v9 = vadd.f32 %v1910_v54, %v4484_v56  ;;  %v1999_v32 = vadd.f32 %v2965_v1, %v1981_v41  ;;  %v4498_v54 = vld [vmem:[#allocation51_spill] sm:$0xff] }
 0x6fd   :  { %v2791_v57 = vpop.f32.mrf.mxu1  ;;  %v1912_v58 = vpop.f32.mrf.mxu0  ;;  %v2209_v41 = vrot.slane %v2201_v63, %v4498_v54  ;;  %v2200_v36 = vrot.slane %v2186_v8, %v4498_v54 }
 0x6fe   :  { %v2375_v33 = vmul.f32 -1.442695, %v1985_v9  ;;  %v1992_v62 = vadd.f32 %v1912_v58, %v4487_v17  ;;  %v2193_v9 = vrot.slane %v2185_v51, %v4498_v54  ;;  %v2216_v57 = vrot.slane %v2202_v10, %v4498_v54 }
 0x700   :  { %2897 = vpow2.f32 %v2375_v33  ;;  %v2376_v43 = vmul.f32 -1.442695, %v1992_v62  ;;  %v2249_v16 = vcombine.low %v2193_v9, %v2209_v41  ;;  %v2250_v17 = vcombine.high %v2193_v9, %v2209_v41 }
 0x702   :  { %2899 = vpow2.f32 %v2376_v43  ;;  %v2264_v14 = vrot.slane %v2250_v17, %v4499_v45 }
 0x70d   :  { %v2898_v2 = vpop.eup %2897 }
 0x70e   :  { %v1989_v42 = vadd.f32 1.0, %v2898_v2 }
 0x70f   :  { %v2900_v6 = vpop.eup %2899 }
 0x710   :  { %2901 = vrcp.f32 %v1989_v42  ;;  %v1996_v22 = vadd.f32 1.0, %v2900_v6  ;;  %v2265_v42 = vcombine.low %v2200_v36, %v2216_v57  ;;  %v2266_v6 = vcombine.high %v2200_v36, %v2216_v57 }
 0x71d   :  { %v2902_v7 = vpop.eup %2901 }
 0x71e   :  { %v2000_v27 = vmul.f32 %v2902_v7, %v1999_v32 }
 0x720   :  { %v2001_v20 = vadd.f32 %v2000_v27, %v4490_v18 }
 0x722   :  { %2903 = vtanh.f32 %v2001_v20 }
 0x723   :  { %2905 = vrcp.f32 %v1996_v22 }
 0x72f   :  { %v2904_v23 = vpop.eup %2903 }
 0x730   :  { %v2003_v24 = vsub.f32 %v4109_v49, %v2904_v23  ;;  %v2906_v26 = vpop.eup %2905 }
 0x732   :  { %v2004_v28 = vmul.f32 %v2906_v26, %v2003_v24  ;;  %v2273_v24 = vrot.slane %v2265_v42, %v4499_v45  ;;  %v2280_v26 = vrot.slane %v2266_v6, %v4499_v45 }
 0x734   :  { %v2005_v29 = vadd.f32 %v2904_v23, %v2004_v28 }
 0x736   :  { %2077 = vmatmul.mubr.f32.vlgmr.msra.gmra.mxu0 %v2005_v29  ;;  %2825 = vmatmul.mubr.f32.vlgmr.msra.gmra.mxu1 %v2005_v29  ;;  %v2217_v55 = vcombine.low %v4027_v37, %v2005_v29  ;;  %v2218_v47 = vcombine.high %v4027_v37, %v2005_v29 }
 0x738   :  { %v2225_v2 = vrot.slane %v2217_v55, %v4498_v54  ;;  %v2232_v37 = vrot.slane %v2218_v47, %v4498_v54 }
 0x7f6   :  { %v2078_v5 = vpop.f32.mrf.mxu0  ;;  %v2149_v19 = vpop.f32.mrf.mxu1 }
 0x7f7   :  { %v2153_v35 = vadd.f32 %v2078_v5, %v4491_v31  ;;  %v2167_v12 = vadd.f32 %v2965_v1, %v2149_v19 }
 0x7f8   :  { %v2826_v13 = vpop.f32.mrf.mxu1  ;;  %v2080_v30 = vpop.f32.mrf.mxu0 }
 0x7f9   :  { %v2377_v21 = vmul.f32 -1.442695, %v2153_v35  ;;  %v2160_v25 = vadd.f32 %v2080_v30, %v4492_v59 }
 0x7fb   :  { %2907 = vpow2.f32 %v2377_v21  ;;  %v2378_v60 = vmul.f32 -1.442695, %v2160_v25 }
 0x7fd   :  { %2909 = vpow2.f32 %v2378_v60 }
 0x808   :  { %v2908_v15 = vpop.eup %2907 }
 0x809   :  { %v2157_v52 = vadd.f32 1.0, %v2908_v15 }
 0x80a   :  { %v2910_v34 = vpop.eup %2909 }
 0x80b   :  { %2911 = vrcp.f32 %v2157_v52  ;;  %v2164_v39 = vadd.f32 1.0, %v2910_v34 }
 0x818   :  { %v2912_v40 = vpop.eup %2911 }
 0x819   :  { %v2168_v61 = vmul.f32 %v2912_v40, %v2167_v12 }
 0x81b   :  { %v2169_v11 = vadd.f32 %v2168_v61, %v4493_v38 }
 0x81d   :  { %2913 = vtanh.f32 %v2169_v11 }
 0x81e   :  { %2915 = vrcp.f32 %v2164_v39 }
 0x82a   :  { %v2914_v46 = vpop.eup %2913 }
 0x82b   :  { %v2171_v0 = vsub.f32 %v2005_v29, %v2914_v46  ;;  %v2916_v44 = vpop.eup %2915 }
 0x82d   :  { %v2172_v53 = vmul.f32 %v2916_v44, %v2171_v0 }
 0x82f   :  { %v2173_v56 = vadd.f32 %v2914_v46, %v2172_v53 }
 0x831   :  { %v2233_v33 = vcombine.low %v4109_v49, %v2173_v56  ;;  %v2234_v58 = vcombine.high %v4109_v49, %v2173_v56  ;;  %v2257_v49 = vrot.slane %v2249_v16, %v4499_v45 }
 0x833   :  { %v2241_v62 = vrot.slane %v2233_v33, %v4498_v54  ;;  %v2248_v43 = vrot.slane %v2234_v58, %v4498_v54 }
 0x835   :  { %v2281_v1 = vcombine.low %v2225_v2, %v2241_v62  ;;  %v2282_v32 = vcombine.high %v2225_v2, %v2241_v62  ;;  %v2297_v7 = vcombine.low %v2232_v37, %v2248_v43  ;;  %v2298_v27 = vcombine.high %v2232_v37, %v2248_v43 }
 0x837   :  { %v2289_v18 = vrot.slane %v2281_v1, %v4499_v45  ;;  %v2296_v20 = vrot.slane %v2282_v32, %v4499_v45  ;;  %v2305_v22 = vrot.slane %v2297_v7, %v4499_v45  ;;  %v2312_v23 = vrot.slane %v2298_v27, %v4499_v45 }
 0x839   :  { %v2313_v28 = vcombine.low %v2257_v49, %v2289_v18  ;;  %v2314_v29 = vcombine.high %v2257_v49, %v2289_v18  ;;  %v2315_v5 = vcombine.low %v2264_v14, %v2296_v20  ;;  %v2316_v19 = vcombine.high %v2264_v14, %v2296_v20 }
 0x83a   :  { %v2317_v31 = vcombine.low %v2273_v24, %v2305_v22  ;;  %v2318_v35 = vcombine.high %v2273_v24, %v2305_v22  ;;  %v2319_v13 = vcombine.low %v2280_v26, %v2312_v23  ;;  %v2320_v21 = vcombine.high %v2280_v26, %v2312_v23 }
 0x83b   :  { %2321 = vst [vmem:[#allocation10] sm:$0xff] %v2313_v28  ;;  %2322 = vst [vmem:[#allocation10 + $0x8] sm:$0xff] %v2314_v29 }
 0x83c   :  { %2323 = vst [vmem:[#allocation10 + $0x10] sm:$0xff] %v2315_v5  ;;  %2324 = vst [vmem:[#allocation10 + $0x18] sm:$0xff] %v2316_v19 }
 0x83d   :  { %2325 = vst [vmem:[#allocation10 + $0x20] sm:$0xff] %v2317_v31  ;;  %2326 = vst [vmem:[#allocation10 + $0x28] sm:$0xff] %v2318_v35 }
 0x83e   :  { %2327 = vst [vmem:[#allocation10 + $0x30] sm:$0xff] %v2319_v13  ;;  %2328 = vst [vmem:[#allocation10 + $0x38] sm:$0xff] %v2320_v21 }
 0x83f   :  { %3037 = shalt.err (!%p3034_p5)
}
 0x840   :  { %2340 = dma.vmem_to_hbm [thread:$0]  %s2335_s12, 1024, %s4239_s5, [#allocation9], %s3055_s21, %s3055_s21, %s3056_s22  }
 0x841   :  { %3052 = dma.done.wait [#allocation9], 1024  }
 0x842   :  { %3053 = vsyncadd [#allocation9], 4294966272 }
 0x843   :  { %2344 = vsyncpa [#allocation8], 1 }
 0x844   :  { %2345 = vsyncpa [#allocation9], 1 }

</bundles_post_ra>
